<compile_context>
chip_gen: v5e
topology: v5e:2x2
jax: 0.10.0
libtpu: 0.0.40
codegen_flags: <defaults>
</compile_context>

<pallas_src>
import jax
import jax.numpy as jnp
from jax.experimental import pallas as pl
from jax.experimental.pallas import tpu as pltpu


CIN, COUT, K = 3, 18, 3
H = W = 32
HP = WP = 16                 # spatial size after 2x2/2 max pool
NPB = HP * WP                # pooled windows per batch element (256)
FC1_IN = COUT * NPB          # 18 * 16 * 16 = 4608
FC1_OUT = 64
FC2_OUT = 10
KK = K * K * CIN             # 27 im2col taps


# ---------------------------------------------------------------------------
# Kernels
# ---------------------------------------------------------------------------

def conv_relu_pool_kernel(p_ref, w_ref, b_ref, o_ref):
    # p_ref: (27, 4*B*256) im2col patches, columns ordered (pool_member, b, i, j)
    # w_ref: (18, 27)   conv weight (transposed, tap-major columns)
    # b_ref: (18, 1)    conv bias
    # o_ref: (B, 18, 256) pooled activations (PyTorch CHW flatten order per batch)
    bsz, cout, npb = o_ref.shape
    chunk = bsz * npb
    conv = jnp.dot(w_ref[...], p_ref[...], preferred_element_type=jnp.float32)
    conv = jnp.maximum(conv + b_ref[...], 0.0)                       # (18, 4*chunk)
    # 2x2 max pool == max over the 4 pool-member chunks (all 128-lane-aligned slices).
    pooled = jnp.maximum(
        jnp.maximum(conv[:, 0 * chunk:1 * chunk], conv[:, 1 * chunk:2 * chunk]),
        jnp.maximum(conv[:, 2 * chunk:3 * chunk], conv[:, 3 * chunk:4 * chunk]),
    )                                                                # (18, B*256)
    for b in range(bsz):                                             # static unroll (B=2)
        o_ref[b, :, :] = pooled[:, b * npb:(b + 1) * npb]


def mlp_head_kernel(x_ref, w1_ref, b1_ref, w2_ref, b2_ref, o_ref):
    # x: (B, 4608) f32, w1: (4608, 64) bf16, b1: (1, 64), w2: (64, 10), b2: (1, 10)
    # bf16 only on the matmul inputs; accumulation + elementwise stay f32 (v5e-safe).
    h = jnp.dot(x_ref[...].astype(w1_ref.dtype), w1_ref[...],
                preferred_element_type=jnp.float32)
    h = jnp.maximum(h + b1_ref[...], 0.0)
    o_ref[...] = jnp.dot(h, w2_ref[...], preferred_element_type=jnp.float32) + b2_ref[...]


# ---------------------------------------------------------------------------
# Forward
# ---------------------------------------------------------------------------

def simple_cnn_forward(x_nchw, kparams):
    wc_t, bc_t, w1_bf16, b1, w2, b2 = kparams
    B = x_nchw.shape[0]
    ncols = 4 * B * NPB

    # --- glue: NCHW -> NHWC, pad, im2col with (pool_member, b, window)-ordered columns ---
    x_nhwc = jnp.transpose(x_nchw, (0, 2, 3, 1)).astype(jnp.float32)       # (B,32,32,3)
    x_pad = jnp.pad(x_nhwc, ((0, 0), (1, 1), (1, 1), (0, 0)))              # (B,34,34,3)
    taps = jnp.concatenate(
        [x_pad[:, dy:dy + H, dx:dx + W, :] for dy in range(K) for dx in range(K)],
        axis=-1)                                                           # (B,32,32,27)
    t = taps.reshape(B, HP, 2, WP, 2, KK)                                  # (b,i,di,j,dj,k)
    patches_t = jnp.transpose(t, (5, 2, 4, 0, 1, 3)).reshape(KK, ncols)    # (27, 2048)

    # --- kernel 1: conv-as-matmul + bias + ReLU + 2x2 max pool, single grid step ---
    pooled = pl.pallas_call(
        conv_relu_pool_kernel,
        out_shape=jax.ShapeDtypeStruct((B, COUT, NPB), jnp.float32),
        grid=(1,),
        in_specs=[
            pl.BlockSpec((KK, ncols), lambda i: (0, 0)),
            pl.BlockSpec((COUT, KK), lambda i: (0, 0)),
            pl.BlockSpec((COUT, 1), lambda i: (0, 0)),
        ],
        out_specs=pl.BlockSpec((B, COUT, NPB), lambda i: (0, 0, 0)),
        compiler_params=pltpu.CompilerParams(dimension_semantics=("arbitrary",)),
    )(patches_t, wc_t, bc_t)                                               # (B, 18, 256)

    # (B, 18, 256) is already PyTorch's (C,H,W) flatten order -> free reshape, no transpose.
    flat = pooled.reshape(B, FC1_IN)                                       # (B, 4608)

    # --- kernel 2: fused fc1 (bf16 weights) + ReLU + fc2 ---
    logits = pl.pallas_call(
        mlp_head_kernel,
        out_shape=jax.ShapeDtypeStruct((B, FC2_OUT), jnp.float32),
        grid=(1,),
        in_specs=[
            pl.BlockSpec((B, FC1_IN), lambda i: (0, 0)),
            pl.BlockSpec((FC1_IN, FC1_OUT), lambda i: (0, 0)),
            pl.BlockSpec((1, FC1_OUT), lambda i: (0, 0)),
            pl.BlockSpec((FC1_OUT, FC2_OUT), lambda i: (0, 0)),
            pl.BlockSpec((1, FC2_OUT), lambda i: (0, 0)),
        ],
        out_specs=pl.BlockSpec((B, FC2_OUT), lambda i: (0, 0)),
        compiler_params=pltpu.CompilerParams(dimension_semantics=("arbitrary",)),
    )(flat, w1_bf16, b1, w2, b2)
    return logits


# ---------------------------------------------------------------------------
# Parameters (synthetic, PyTorch-style uniform bounds) + one-time kernel prep
# ---------------------------------------------------------------------------

def init_params(key):
    ks = jax.random.split(key, 6)

    def u(k, shape, fan_in):
        bound = 1.0 / jnp.sqrt(jnp.float32(fan_in))
        return jax.random.uniform(k, shape, jnp.float32, -bound, bound)

    w_conv = u(ks[0], (COUT, CIN, K, K), CIN * K * K)      # PyTorch Conv2d (O,I,kh,kw)
    b_conv = u(ks[1], (COUT,), CIN * K * K)
    w1 = u(ks[2], (FC1_IN, FC1_OUT), FC1_IN)               # stored as (in, out)
    b1 = u(ks[3], (FC1_OUT,), FC1_IN)
    w2 = u(ks[4], (FC1_OUT, FC2_OUT), FC1_OUT)
    b2 = u(ks[5], (FC2_OUT,), FC1_OUT)
    return (w_conv, b_conv, w1, b1, w2, b2)


def prepare_params(params):
    """One-time layout/dtype prep (kept off the per-forward path)."""
    w_conv, b_conv, w1, b1, w2, b2 = params
    # (O,I,kh,kw) -> (O, kh, kw, I) -> (18, 27): column index = (dy*3+dx)*3 + cin,
    # matching the im2col tap order built in the wrapper.
    wc_t = jnp.transpose(w_conv, (0, 2, 3, 1)).reshape(COUT, KK).astype(jnp.float32)
    bc_t = b_conv.reshape(COUT, 1).astype(jnp.float32)
    w1_bf16 = w1.astype(jnp.bfloat16)                      # bf16 halves the biggest DMA
    return (wc_t, bc_t, w1_bf16,
            b1.reshape(1, FC1_OUT).astype(jnp.float32),
            w2.astype(jnp.float32),
            b2.reshape(1, FC2_OUT).astype(jnp.float32))


def reference_forward(x_nchw, params, fc1_matmul_dtype=jnp.float32):
    # Pure-JAX reference mirroring the PyTorch forward (NCHW throughout).
    w_conv, b_conv, w1, b1, w2, b2 = params
    y = jax.lax.conv_general_dilated(
        x_nchw, w_conv, window_strides=(1, 1), padding=((1, 1), (1, 1)),
        dimension_numbers=("NCHW", "OIHW", "NCHW"))
    y = jnp.maximum(y + b_conv[None, :, None, None], 0.0)
    y = jax.lax.reduce_window(y, -jnp.inf, jax.lax.max,
                              (1, 1, 2, 2), (1, 1, 2, 2), "VALID")
    y = y.reshape(y.shape[0], -1)
    h = jnp.dot(y.astype(fc1_matmul_dtype), w1.astype(fc1_matmul_dtype),
                preferred_element_type=jnp.float32) + b1
    h = jnp.maximum(h, 0.0)
    return h @ w2 + b2


if __name__ == "__main__":
    key = jax.random.PRNGKey(0)
    pkey, xkey = jax.random.split(key)
    params = init_params(pkey)
    kparams = prepare_params(params)
    x = jax.random.normal(xkey, (2, CIN, H, W), jnp.float32)   # NCHW, like PyTorch

    fwd = jax.jit(simple_cnn_forward)
    out = jax.block_until_ready(fwd(x, kparams))
    assert out.shape == (2, FC2_OUT)

    # Tight check vs a reference that emulates the kernel's bf16 fc1 matmul inputs.
    ref_bf16 = jax.block_until_ready(
        reference_forward(x, params, fc1_matmul_dtype=jnp.bfloat16))
    assert jnp.allclose(out, ref_bf16, atol=2e-3, rtol=2e-3), \
        float(jnp.max(jnp.abs(out - ref_bf16)))

    # Loose check vs the pure-f32 PyTorch-equivalent reference (bf16 fc1 weight drift).
    ref_f32 = jax.block_until_ready(reference_forward(x, params))
    assert jnp.allclose(out, ref_f32, atol=1e-2, rtol=1e-2), \
        float(jnp.max(jnp.abs(out - ref_f32)))

    print("KERNEL_OK")
</pallas_src>

<mosaic_0001>
module attributes {stable_mosaic.version = 11 : i64} {
  func.func @conv_relu_pool_kernel(%arg0: i32, %arg1: memref<27x2048xf32, #tpu.memory_space<vmem>>, %arg2: memref<18x27xf32, #tpu.memory_space<vmem>>, %arg3: memref<18x1xf32, #tpu.memory_space<vmem>>, %arg4: memref<2x18x256xf32, #tpu.memory_space<vmem>>) attributes {dimension_semantics = [#tpu.dimension_semantics<arbitrary>], iteration_bounds = array<i64: 1>, scalar_prefetch = 0 : i64, scratch_operands = 0 : i64, tpu.core_type = #tpu.core_type<tc>, window_params = [{pipeline_mode = #tpu.pipeline_mode<synchronous>, transform_indices = @transform_0, window_bounds = array<i64: 27, 2048>}, {pipeline_mode = #tpu.pipeline_mode<synchronous>, transform_indices = @transform_1, window_bounds = array<i64: 18, 27>}, {pipeline_mode = #tpu.pipeline_mode<synchronous>, transform_indices = @transform_2, window_bounds = array<i64: 18, 1>}, {pipeline_mode = #tpu.pipeline_mode<synchronous>, transform_indices = @transform_3, window_bounds = array<i64: 2, 18, 256>}]} {
    %c0 = arith.constant 0 : index
    %c0_0 = arith.constant 0 : index
    %0 = vector.load %arg2[%c0, %c0_0] : memref<18x27xf32, #tpu.memory_space<vmem>>, vector<18x27xf32>
    %c0_1 = arith.constant 0 : index
    %c0_2 = arith.constant 0 : index
    %1 = vector.load %arg1[%c0_1, %c0_2] : memref<27x2048xf32, #tpu.memory_space<vmem>>, vector<27x2048xf32>
    %cst = arith.constant dense<0.000000e+00> : vector<18x2048xf32>
    %2 = tpu.matmul %0, %1, %cst {dimension_numbers = #tpu.dot_dimension_numbers<[1], [0], [0], [1], [0, 0, 1, 1], [], []>} : vector<18x27xf32>, vector<27x2048xf32>, vector<18x2048xf32> -> vector<18x2048xf32>
    %c0_3 = arith.constant 0 : index
    %c0_4 = arith.constant 0 : index
    %3 = vector.load %arg3[%c0_3, %c0_4] : memref<18x1xf32, #tpu.memory_space<vmem>>, vector<18x1xf32>
    %4 = vector.broadcast %3 : vector<18x1xf32> to vector<18x2048xf32>
    %5 = arith.addf %2, %4 : vector<18x2048xf32>
    %cst_5 = arith.constant 0.000000e+00 : f32
    %6 = vector.broadcast %cst_5 : f32 to vector<18x2048xf32>
    %7 = arith.maximumf %5, %6 : vector<18x2048xf32>
    %8 = vector.extract_strided_slice %7 {offsets = [0, 0], sizes = [18, 512], strides = [1, 1]} : vector<18x2048xf32> to vector<18x512xf32>
    %9 = vector.extract_strided_slice %7 {offsets = [0, 512], sizes = [18, 512], strides = [1, 1]} : vector<18x2048xf32> to vector<18x512xf32>
    %10 = arith.maximumf %8, %9 : vector<18x512xf32>
    %11 = vector.extract_strided_slice %7 {offsets = [0, 1024], sizes = [18, 512], strides = [1, 1]} : vector<18x2048xf32> to vector<18x512xf32>
    %12 = vector.extract_strided_slice %7 {offsets = [0, 1536], sizes = [18, 512], strides = [1, 1]} : vector<18x2048xf32> to vector<18x512xf32>
    %13 = arith.maximumf %11, %12 : vector<18x512xf32>
    %14 = arith.maximumf %10, %13 : vector<18x512xf32>
    %15 = vector.extract_strided_slice %14 {offsets = [0, 0], sizes = [18, 256], strides = [1, 1]} : vector<18x512xf32> to vector<18x256xf32>
    %c0_6 = arith.constant 0 : index
    %c0_7 = arith.constant 0 : index
    %c0_8 = arith.constant 0 : index
    %16 = vector.load %arg4[%c0_6, %c0_7, %c0_8] : memref<2x18x256xf32, #tpu.memory_space<vmem>>, vector<1x18x256xf32>
    %17 = vector.shape_cast %16 : vector<1x18x256xf32> to vector<18x256xf32>
    %18 = vector.shape_cast %15 : vector<18x256xf32> to vector<1x18x256xf32>
    tpu.vector_store %arg4[%c0_6, %c0_7, %c0_8], %18 {strides = array<i32>} : memref<2x18x256xf32, #tpu.memory_space<vmem>>, vector<1x18x256xf32>,
    %19 = vector.extract_strided_slice %14 {offsets = [0, 256], sizes = [18, 256], strides = [1, 1]} : vector<18x512xf32> to vector<18x256xf32>
    %c1 = arith.constant 1 : index
    %c0_9 = arith.constant 0 : index
    %c0_10 = arith.constant 0 : index
    %20 = vector.load %arg4[%c1, %c0_9, %c0_10] : memref<2x18x256xf32, #tpu.memory_space<vmem>>, vector<1x18x256xf32>
    %21 = vector.shape_cast %20 : vector<1x18x256xf32> to vector<18x256xf32>
    %22 = vector.shape_cast %19 : vector<18x256xf32> to vector<1x18x256xf32>
    tpu.vector_store %arg4[%c1, %c0_9, %c0_10], %22 {strides = array<i32>} : memref<2x18x256xf32, #tpu.memory_space<vmem>>, vector<1x18x256xf32>,
    return
  }
  func.func @transform_0(%arg0: i32) -> (i32, i32) {
    %c0_i32 = arith.constant 0 : i32
    %c0_i32_0 = arith.constant 0 : i32
    %c0_i32_1 = arith.constant 0 : i32
    return %c0_i32, %c0_i32_0 : i32, i32
  }
  func.func @transform_1(%arg0: i32) -> (i32, i32) {
    %c0_i32 = arith.constant 0 : i32
    %c0_i32_0 = arith.constant 0 : i32
    %c0_i32_1 = arith.constant 0 : i32
    return %c0_i32, %c0_i32_0 : i32, i32
  }
  func.func @transform_2(%arg0: i32) -> (i32, i32) {
    %c0_i32 = arith.constant 0 : i32
    %c0_i32_0 = arith.constant 0 : i32
    %c0_i32_1 = arith.constant 0 : i32
    return %c0_i32, %c0_i32_0 : i32, i32
  }
  func.func @transform_3(%arg0: i32) -> (i32, i32, i32) {
    %c0_i32 = arith.constant 0 : i32
    %c0_i32_0 = arith.constant 0 : i32
    %c0_i32_1 = arith.constant 0 : i32
    %c0_i32_2 = arith.constant 0 : i32
    return %c0_i32, %c0_i32_0, %c0_i32_1 : i32, i32, i32
  }
}

module attributes {stable_mosaic.version = 11 : i64} {
  func.func @mlp_head_kernel(%arg0: i32, %arg1: memref<2x4608xf32, #tpu.memory_space<vmem>>, %arg2: memref<4608x64xbf16, #tpu.memory_space<vmem>>, %arg3: memref<1x64xf32, #tpu.memory_space<vmem>>, %arg4: memref<64x10xf32, #tpu.memory_space<vmem>>, %arg5: memref<1x10xf32, #tpu.memory_space<vmem>>, %arg6: memref<2x10xf32, #tpu.memory_space<vmem>>) attributes {dimension_semantics = [#tpu.dimension_semantics<arbitrary>], iteration_bounds = array<i64: 1>, scalar_prefetch = 0 : i64, scratch_operands = 0 : i64, tpu.core_type = #tpu.core_type<tc>, window_params = [{pipeline_mode = #tpu.pipeline_mode<synchronous>, transform_indices = @transform_0, window_bounds = array<i64: 2, 4608>}, {pipeline_mode = #tpu.pipeline_mode<synchronous>, transform_indices = @transform_1, window_bounds = array<i64: 4608, 64>}, {pipeline_mode = #tpu.pipeline_mode<synchronous>, transform_indices = @transform_2, window_bounds = array<i64: 1, 64>}, {pipeline_mode = #tpu.pipeline_mode<synchronous>, transform_indices = @transform_3, window_bounds = array<i64: 64, 10>}, {pipeline_mode = #tpu.pipeline_mode<synchronous>, transform_indices = @transform_4, window_bounds = array<i64: 1, 10>}, {pipeline_mode = #tpu.pipeline_mode<synchronous>, transform_indices = @transform_5, window_bounds = array<i64: 2, 10>}]} {
    %c0 = arith.constant 0 : index
    %c0_0 = arith.constant 0 : index
    %0 = vector.load %arg1[%c0, %c0_0] : memref<2x4608xf32, #tpu.memory_space<vmem>>, vector<2x4608xf32>
    %1 = arith.truncf %0 : vector<2x4608xf32> to vector<2x4608xbf16>
    %c0_1 = arith.constant 0 : index
    %c0_2 = arith.constant 0 : index
    %2 = vector.load %arg2[%c0_1, %c0_2] : memref<4608x64xbf16, #tpu.memory_space<vmem>>, vector<4608x64xbf16>
    %cst = arith.constant dense<0.000000e+00> : vector<2x64xf32>
    %3 = tpu.matmul %1, %2, %cst {dimension_numbers = #tpu.dot_dimension_numbers<[1], [0], [0], [1], [0, 0, 1, 1], [], []>} : vector<2x4608xbf16>, vector<4608x64xbf16>, vector<2x64xf32> -> vector<2x64xf32>
    %c0_3 = arith.constant 0 : index
    %c0_4 = arith.constant 0 : index
    %4 = vector.load %arg3[%c0_3, %c0_4] : memref<1x64xf32, #tpu.memory_space<vmem>>, vector<1x64xf32>
    %5 = vector.broadcast %4 : vector<1x64xf32> to vector<2x64xf32>
    %6 = arith.addf %3, %5 : vector<2x64xf32>
    %cst_5 = arith.constant 0.000000e+00 : f32
    %7 = vector.broadcast %cst_5 : f32 to vector<2x64xf32>
    %8 = arith.maximumf %6, %7 : vector<2x64xf32>
    %c0_6 = arith.constant 0 : index
    %c0_7 = arith.constant 0 : index
    %9 = vector.load %arg4[%c0_6, %c0_7] : memref<64x10xf32, #tpu.memory_space<vmem>>, vector<64x10xf32>
    %cst_8 = arith.constant dense<0.000000e+00> : vector<2x10xf32>
    %10 = tpu.matmul %8, %9, %cst_8 {dimension_numbers = #tpu.dot_dimension_numbers<[1], [0], [0], [1], [0, 0, 1, 1], [], []>} : vector<2x64xf32>, vector<64x10xf32>, vector<2x10xf32> -> vector<2x10xf32>
    %c0_9 = arith.constant 0 : index
    %c0_10 = arith.constant 0 : index
    %11 = vector.load %arg5[%c0_9, %c0_10] : memref<1x10xf32, #tpu.memory_space<vmem>>, vector<1x10xf32>
    %12 = vector.broadcast %11 : vector<1x10xf32> to vector<2x10xf32>
    %13 = arith.addf %10, %12 : vector<2x10xf32>
    %c0_11 = arith.constant 0 : index
    %c0_12 = arith.constant 0 : index
    %14 = vector.load %arg6[%c0_11, %c0_12] : memref<2x10xf32, #tpu.memory_space<vmem>>, vector<2x10xf32>
    tpu.vector_store %arg6[%c0_11, %c0_12], %13 {strides = array<i32>} : memref<2x10xf32, #tpu.memory_space<vmem>>, vector<2x10xf32>,
    return
  }
  func.func @transform_0(%arg0: i32) -> (i32, i32) {
    %c0_i32 = arith.constant 0 : i32
    %c0_i32_0 = arith.constant 0 : i32
    %c0_i32_1 = arith.constant 0 : i32
    return %c0_i32, %c0_i32_0 : i32, i32
  }
  func.func @transform_1(%arg0: i32) -> (i32, i32) {
    %c0_i32 = arith.constant 0 : i32
    %c0_i32_0 = arith.constant 0 : i32
    %c0_i32_1 = arith.constant 0 : i32
    return %c0_i32, %c0_i32_0 : i32, i32
  }
  func.func @transform_2(%arg0: i32) -> (i32, i32) {
    %c0_i32 = arith.constant 0 : i32
    %c0_i32_0 = arith.constant 0 : i32
    %c0_i32_1 = arith.constant 0 : i32
    return %c0_i32, %c0_i32_0 : i32, i32
  }
  func.func @transform_3(%arg0: i32) -> (i32, i32) {
    %c0_i32 = arith.constant 0 : i32
    %c0_i32_0 = arith.constant 0 : i32
    %c0_i32_1 = arith.constant 0 : i32
    return %c0_i32, %c0_i32_0 : i32, i32
  }
  func.func @transform_4(%arg0: i32) -> (i32, i32) {
    %c0_i32 = arith.constant 0 : i32
    %c0_i32_0 = arith.constant 0 : i32
    %c0_i32_1 = arith.constant 0 : i32
    return %c0_i32, %c0_i32_0 : i32, i32
  }
  func.func @transform_5(%arg0: i32) -> (i32, i32) {
    %c0_i32 = arith.constant 0 : i32
    %c0_i32_0 = arith.constant 0 : i32
    %c0_i32_1 = arith.constant 0 : i32
    return %c0_i32, %c0_i32_0 : i32, i32
  }
}

</mosaic_0001>

<bundles_post_ra>
// kernel: simple_cnn_forward.2
= control target key start
LH: loop header
LB: loop body
LE: loop exit
PB: predicated region body
PF: predicated region fallthrough
CT: control target
= control target key end

     0   :  { %vm109_vm0 = vcmask 1042432   ;;  %v748_v3 = vmov 0   ;;  %vm99_vm1 = vcmask 220160   ;;  %s1261_s0 = inlined_call_operand.vmem [shape: f32[27,2048], index: 0, kind: input, shape index: {}]   ;;  %s1262_s1 = inlined_call_operand.vmem [shape: f32[18,27], index: 1, kind: input, shape index: {}]   ;;  %s1263_s2 = inlined_call_operand.vmem [shape: f32[18,1], index: 2, kind: input, shape index: {}]   ;;  %s1264_s3 = inlined_call_operand.vmem [shape: f32[2,18,256], index: 3, kind: output, shape index: {}]  }
   0x1   :  { %v65_v0 = vld [vmem:[%s1261_s0 + $0x180] sm:$0x7]  ;;  %v66_v1 = vld [vmem:[%s1261_s0 + $0x188] sm:$0x7]  ;;  %v67_v2 = vld [vmem:[%s1261_s0 + $0x190] sm:$0x7]  ;;  %746 = vset.pattern.permute.xlu0 %v748_v3  ;;  %747 = vset.pattern.permute.xlu1 %v748_v3 }
   0x2   :  { %675 = vmatpush.msk.msra.mxu0 %vm109_vm0, %v65_v0  ;;  %679 = vmatpush.msk.msra.mxu1 %vm109_vm0, %v66_v1  ;;  %v68_v4 = vld [vmem:[%s1261_s0 + $0x198] sm:$0x7]  ;;  %v49_v5 = vld [vmem:[%s1261_s0 + $0x100] sm:$0xff]  ;;  %v50_v6 = vld [vmem:[%s1261_s0 + $0x108] sm:$0xff] }
   0x3   :  { %683 = vmatpush.msk.msra.mxu2 %vm109_vm0, %v67_v2  ;;  %687 = vmatpush.msk.msra.mxu3 %vm109_vm0, %v68_v4  ;;  %v51_v7 = vld [vmem:[%s1261_s0 + $0x110] sm:$0xff]  ;;  %v52_v8 = vld [vmem:[%s1261_s0 + $0x118] sm:$0xff]  ;;  %v33_v9 = vld [vmem:[%s1261_s0 + $0x80] sm:$0xff] }
   0x4   :  { %171 = vmatpush.msra.mxu0 %v49_v5  ;;  %197 = vmatpush.msra.mxu1 %v50_v6  ;;  %v34_v10 = vld [vmem:[%s1261_s0 + $0x88] sm:$0xff]  ;;  %v35_v11 = vld [vmem:[%s1261_s0 + $0x90] sm:$0xff]  ;;  %v36_v12 = vld [vmem:[%s1261_s0 + $0x98] sm:$0xff] }
   0x5   :  { %223 = vmatpush.msra.mxu2 %v51_v7  ;;  %249 = vmatpush.msra.mxu3 %v52_v8  ;;  %v17_v13 = vld [vmem:[%s1261_s0] sm:$0xff]  ;;  %v18_v14 = vld [vmem:[%s1261_s0 + $0x8] sm:$0xff]  ;;  %v19_v15 = vld [vmem:[%s1261_s0 + $0x10] sm:$0xff] }
   0x6   :  { %172 = vmatpush.msra.mxu0 %v33_v9  ;;  %198 = vmatpush.msra.mxu1 %v34_v10  ;;  %v20_v16 = vld [vmem:[%s1261_s0 + $0x18] sm:$0xff]  ;;  %v824_v17 = vld [vmem:[%s1262_s1] sm:$0xff]  ;;  %v71_v18 = vld [vmem:[%s1261_s0 + $0x1b0] sm:$0x7] }
   0x7   :  { %224 = vmatpush.msra.mxu2 %v35_v11  ;;  %250 = vmatpush.msra.mxu3 %v36_v12  ;;  %v72_v19 = vld [vmem:[%s1261_s0 + $0x1b8] sm:$0x7]  ;;  %v69_v20 = vld [vmem:[%s1261_s0 + $0x1a0] sm:$0x7]  ;;  %v70_v21 = vld [vmem:[%s1261_s0 + $0x1a8] sm:$0x7] }
   0x8   :  { %173 = vmatpush.msra.mxu0 %v17_v13  ;;  %199 = vmatpush.msra.mxu1 %v18_v14  ;;  %v55_v22 = vld [vmem:[%s1261_s0 + $0x130] sm:$0xff]  ;;  %v56_v23 = vld [vmem:[%s1261_s0 + $0x138] sm:$0xff]  ;;  %v53_v24 = vld [vmem:[%s1261_s0 + $0x120] sm:$0xff] }
   0x9   :  { %225 = vmatpush.msra.mxu2 %v19_v15  ;;  %251 = vmatpush.msra.mxu3 %v20_v16  ;;  %v54_v25 = vld [vmem:[%s1261_s0 + $0x128] sm:$0xff]  ;;  %v39_v26 = vld [vmem:[%s1261_s0 + $0xb0] sm:$0xff]  ;;  %v40_v27 = vld [vmem:[%s1261_s0 + $0xb8] sm:$0xff] }
   0xa   :  { %676 = vmatmul.msk.f32.vlgmr.msra.gmra.mxu0 %vm99_vm1, %v824_v17  ;;  %680 = vmatmul.msk.f32.vlgmr.msra.gmra.mxu1 %vm99_vm1, %v824_v17  ;;  %v81_v28 = vld [vmem:[%s1263_s2] sm:$0xff]  ;;  %v877_v30 = vld [vmem:[%s1262_s1 + $0x8] sm:$0xff]  ;;  %v23_v32 = vld [vmem:[%s1261_s0 + $0x30] sm:$0xff] }
   0xb   :  { %684 = vmatmul.msk.f32.vlgmr.msra.gmra.mxu2 %vm99_vm1, %v824_v17  ;;  %688 = vmatmul.msk.f32.vlgmr.msra.gmra.mxu3 %vm99_vm1, %v824_v17  ;;  %v37_v29 = vld [vmem:[%s1261_s0 + $0xa0] sm:$0xff]  ;;  %v38_v31 = vld [vmem:[%s1261_s0 + $0xa8] sm:$0xff]  ;;  %v24_v33 = vld [vmem:[%s1261_s0 + $0x38] sm:$0xff] }
   0xc   :  { %699 = vmatpush.msk.msrb.mxu2 %vm109_vm0, %v71_v18  ;;  %703 = vmatpush.msk.msrb.mxu3 %vm109_vm0, %v72_v19  ;;  %v21_v34 = vld [vmem:[%s1261_s0 + $0x20] sm:$0xff]  ;;  %v22_v35 = vld [vmem:[%s1261_s0 + $0x28] sm:$0xff]  ;;  %v75_v36 = vld [vmem:[%s1261_s0 + $0x1d0] sm:$0x7] }
   0xd   :  { %691 = vmatpush.msk.msrb.mxu0 %vm109_vm0, %v69_v20  ;;  %695 = vmatpush.msk.msrb.mxu1 %vm109_vm0, %v70_v21  ;;  %v76_v37 = vld [vmem:[%s1261_s0 + $0x1d8] sm:$0x7]  ;;  %v73_v38 = vld [vmem:[%s1261_s0 + $0x1c0] sm:$0x7]  ;;  %v74_v39 = vld [vmem:[%s1261_s0 + $0x1c8] sm:$0x7] }
   0xe   :  { %327 = vmatpush.msrb.mxu2 %v55_v22  ;;  %353 = vmatpush.msrb.mxu3 %v56_v23  ;;  %v59_v40 = vld [vmem:[%s1261_s0 + $0x150] sm:$0xff]  ;;  %v82_v41 = vld [vmem:[%s1263_s2 + $0x8] sm:$0xff]  ;;  %v60_v42 = vld [vmem:[%s1261_s0 + $0x158] sm:$0xff] }
   0xf   :  { %275 = vmatpush.msrb.mxu0 %v53_v24  ;;  %301 = vmatpush.msrb.mxu1 %v54_v25  ;;  %v927_v43 = vld [vmem:[%s1262_s1 + $0x10] sm:$0x3]  ;;  %v57_v45 = vld [vmem:[%s1261_s0 + $0x140] sm:$0xff]  ;;  %v58_v46 = vld [vmem:[%s1261_s0 + $0x148] sm:$0xff] }
  0x10   :  { %328 = vmatpush.msrb.mxu2 %v39_v26  ;;  %354 = vmatpush.msrb.mxu3 %v40_v27  ;;  %v83_v44 = vld [vmem:[%s1263_s2 + $0x10] sm:$0x3]  ;;  %v44_v48 = vld [vmem:[%s1261_s0 + $0xd8] sm:$0xff]  ;;  %v41_v49 = vld [vmem:[%s1261_s0 + $0xc0] sm:$0xff] }
  0x11   :  { %86 = vperm.xlu0 %746, %v81_v28   ;;  %276 = vmatpush.msrb.mxu0 %v37_v29  ;;  %v43_v47 = vld [vmem:[%s1261_s0 + $0xd0] sm:$0xff]  ;;  %v42_v50 = vld [vmem:[%s1261_s0 + $0xc8] sm:$0xff]  ;;  %v28_v52 = vld [vmem:[%s1261_s0 + $0x58] sm:$0xff] }
  0x12   :  { %677 = vmatmul.msk.f32.gmra.mxu0 %vm99_vm1, %v877_v30  ;;  %681 = vmatmul.msk.f32.gmra.mxu1 %vm99_vm1, %v877_v30  ;;  %v27_v51 = vld [vmem:[%s1261_s0 + $0x50] sm:$0xff]  ;;  %v25_v53 = vld [vmem:[%s1261_s0 + $0x40] sm:$0xff]  ;;  %v26_v54 = vld [vmem:[%s1261_s0 + $0x48] sm:$0xff] }
  0x13   :  { %685 = vmatmul.msk.f32.gmra.mxu2 %vm99_vm1, %v877_v30  ;;  %689 = vmatmul.msk.f32.gmra.mxu3 %vm99_vm1, %v877_v30  ;;  %v79_v55 = vld [vmem:[%s1261_s0 + $0x1f0] sm:$0x7]  ;;  %v80_v56 = vld [vmem:[%s1261_s0 + $0x1f8] sm:$0x7]  ;;  %v77_v57 = vld [vmem:[%s1261_s0 + $0x1e0] sm:$0x7] }
  0x14   :  { %302 = vmatpush.msrb.mxu1 %v38_v31  ;;  %329 = vmatpush.msrb.mxu2 %v23_v32  ;;  %v78_v58 = vld [vmem:[%s1261_s0 + $0x1e8] sm:$0x7]  ;;  %v63_v59 = vld [vmem:[%s1261_s0 + $0x170] sm:$0xff]  ;;  %v64_v60 = vld [vmem:[%s1261_s0 + $0x178] sm:$0xff] }
  0x15   :  { %355 = vmatpush.msrb.mxu3 %v24_v33  ;;  %277 = vmatpush.msrb.mxu0 %v21_v34  ;;  %v61_v61 = vld [vmem:[%s1261_s0 + $0x160] sm:$0xff]  ;;  %v62_v62 = vld [vmem:[%s1261_s0 + $0x168] sm:$0xff]  ;;  %v47_v63 = vld [vmem:[%s1261_s0 + $0xf0] sm:$0xff] }
  0x16   :  { %303 = vmatpush.msrb.mxu1 %v22_v35  ;;  %715 = vmatpush.msk.msra.mxu2 %vm109_vm0, %v75_v36  ;;  %v48_v0 = vld [vmem:[%s1261_s0 + $0xf8] sm:$0xff]  ;;  %v45_v1 = vld [vmem:[%s1261_s0 + $0xe0] sm:$0xff]  ;;  %v46_v2 = vld [vmem:[%s1261_s0 + $0xe8] sm:$0xff] }
  0x17   :  { %719 = vmatpush.msk.msra.mxu3 %vm109_vm0, %v76_v37  ;;  %707 = vmatpush.msk.msra.mxu0 %vm109_vm0, %v73_v38  ;;  %v31_v3 = vld [vmem:[%s1261_s0 + $0x70] sm:$0xff]  ;;  %v32_v4 = vld [vmem:[%s1261_s0 + $0x78] sm:$0xff]  ;;  %v29_v5 = vld [vmem:[%s1261_s0 + $0x60] sm:$0xff] }
  0x18   :  { %711 = vmatpush.msk.msra.mxu1 %vm109_vm0, %v74_v39  ;;  %431 = vmatpush.msra.mxu2 %v59_v40  ;;  %v30_v6 = vld [vmem:[%s1261_s0 + $0x68] sm:$0xff] }
  0x19   :  { %91 = vperm.xlu0 %746, %v82_v41   ;;  %457 = vmatpush.msra.mxu3 %v60_v42 }
  0x1a   :  { %678 = vmatmul.msk.f32.gmra.mxu0 %vm99_vm1, %v927_v43  ;;  %682 = vmatmul.msk.f32.gmra.mxu1 %vm99_vm1, %v927_v43 }
  0x1b   :  { %686 = vmatmul.msk.f32.gmra.mxu2 %vm99_vm1, %v927_v43  ;;  %690 = vmatmul.msk.f32.gmra.mxu3 %vm99_vm1, %v927_v43 }
  0x1c   :  { %96 = vperm.xlu1 %747, %v83_v44   ;;  %379 = vmatpush.msra.mxu0 %v57_v45 }
  0x1d   :  { %405 = vmatpush.msra.mxu1 %v58_v46  ;;  %432 = vmatpush.msra.mxu2 %v43_v47 }
  0x1e   :  { %458 = vmatpush.msra.mxu3 %v44_v48  ;;  %380 = vmatpush.msra.mxu0 %v41_v49 }
  0x1f   :  { %406 = vmatpush.msra.mxu1 %v42_v50  ;;  %433 = vmatpush.msra.mxu2 %v27_v51 }
  0x20   :  { %459 = vmatpush.msra.mxu3 %v28_v52  ;;  %381 = vmatpush.msra.mxu0 %v25_v53 }
  0x21   :  { %407 = vmatpush.msra.mxu1 %v26_v54 }
  0x22   :  { %692 = vmatmul.msk.f32.vlgmr.msrb.gmra.mxu0 %vm99_vm1, %v824_v17  ;;  %696 = vmatmul.msk.f32.vlgmr.msrb.gmra.mxu1 %vm99_vm1, %v824_v17 }
  0x23   :  { %700 = vmatmul.msk.f32.vlgmr.msrb.gmra.mxu2 %vm99_vm1, %v824_v17  ;;  %704 = vmatmul.msk.f32.vlgmr.msrb.gmra.mxu3 %vm99_vm1, %v824_v17 }
  0x24   :  { %731 = vmatpush.msk.msrb.mxu2 %vm109_vm0, %v79_v55  ;;  %735 = vmatpush.msk.msrb.mxu3 %vm109_vm0, %v80_v56 }
  0x25   :  { %723 = vmatpush.msk.msrb.mxu0 %vm109_vm0, %v77_v57  ;;  %727 = vmatpush.msk.msrb.mxu1 %vm109_vm0, %v78_v58 }
  0x26   :  { %535 = vmatpush.msrb.mxu2 %v63_v59  ;;  %561 = vmatpush.msrb.mxu3 %v64_v60 }
  0x27   :  { %483 = vmatpush.msrb.mxu0 %v61_v61  ;;  %509 = vmatpush.msrb.mxu1 %v62_v62 }
  0x28   :  { %536 = vmatpush.msrb.mxu2 %v47_v63  ;;  %562 = vmatpush.msrb.mxu3 %v48_v0 }
  0x29   :  { %484 = vmatpush.msrb.mxu0 %v45_v1  ;;  %510 = vmatpush.msrb.mxu1 %v46_v2 }
  0x2a   :  { %693 = vmatmul.msk.f32.gmra.mxu0 %vm99_vm1, %v877_v30  ;;  %697 = vmatmul.msk.f32.gmra.mxu1 %vm99_vm1, %v877_v30 }
  0x2b   :  { %701 = vmatmul.msk.f32.gmra.mxu2 %vm99_vm1, %v877_v30  ;;  %705 = vmatmul.msk.f32.gmra.mxu3 %vm99_vm1, %v877_v30 }
  0x2c   :  { %537 = vmatpush.msrb.mxu2 %v31_v3  ;;  %563 = vmatpush.msrb.mxu3 %v32_v4 }
  0x2d   :  { %485 = vmatpush.msrb.mxu0 %v29_v5  ;;  %511 = vmatpush.msrb.mxu1 %v30_v6 }
  0x32   :  { %694 = vmatmul.msk.f32.gmra.mxu0 %vm99_vm1, %v927_v43  ;;  %698 = vmatmul.msk.f32.gmra.mxu1 %vm99_vm1, %v927_v43 }
  0x33   :  { %702 = vmatmul.msk.f32.gmra.mxu2 %vm99_vm1, %v927_v43  ;;  %706 = vmatmul.msk.f32.gmra.mxu3 %vm99_vm1, %v927_v43 }
  0x3a   :  { %708 = vmatmul.msk.f32.vlgmr.msra.gmra.mxu0 %vm99_vm1, %v824_v17  ;;  %712 = vmatmul.msk.f32.vlgmr.msra.gmra.mxu1 %vm99_vm1, %v824_v17 }
  0x3b   :  { %716 = vmatmul.msk.f32.vlgmr.msra.gmra.mxu2 %vm99_vm1, %v824_v17  ;;  %720 = vmatmul.msk.f32.vlgmr.msra.gmra.mxu3 %vm99_vm1, %v824_v17 }
  0x42   :  { %709 = vmatmul.msk.f32.gmra.mxu0 %vm99_vm1, %v877_v30  ;;  %713 = vmatmul.msk.f32.gmra.mxu1 %vm99_vm1, %v877_v30 }
  0x43   :  { %717 = vmatmul.msk.f32.gmra.mxu2 %vm99_vm1, %v877_v30  ;;  %721 = vmatmul.msk.f32.gmra.mxu3 %vm99_vm1, %v877_v30 }
  0x4a   :  { %710 = vmatmul.msk.f32.gmra.mxu0 %vm99_vm1, %v927_v43  ;;  %714 = vmatmul.msk.f32.gmra.mxu1 %vm99_vm1, %v927_v43 }
  0x4b   :  { %718 = vmatmul.msk.f32.gmra.mxu2 %vm99_vm1, %v927_v43  ;;  %722 = vmatmul.msk.f32.gmra.mxu3 %vm99_vm1, %v927_v43 }
  0x52   :  { %724 = vmatmul.msk.f32.vlgmr.msrb.gmra.mxu0 %vm99_vm1, %v824_v17  ;;  %728 = vmatmul.msk.f32.vlgmr.msrb.gmra.mxu1 %vm99_vm1, %v824_v17 }
  0x53   :  { %732 = vmatmul.msk.f32.vlgmr.msrb.gmra.mxu2 %vm99_vm1, %v824_v17  ;;  %736 = vmatmul.msk.f32.vlgmr.msrb.gmra.mxu3 %vm99_vm1, %v824_v17 }
  0x5a   :  { %725 = vmatmul.msk.f32.gmra.mxu0 %vm99_vm1, %v877_v30  ;;  %729 = vmatmul.msk.f32.gmra.mxu1 %vm99_vm1, %v877_v30 }
  0x5b   :  { %733 = vmatmul.msk.f32.gmra.mxu2 %vm99_vm1, %v877_v30  ;;  %737 = vmatmul.msk.f32.gmra.mxu3 %vm99_vm1, %v877_v30 }
  0x62   :  { %726 = vmatmul.msk.f32.gmra.mxu0 %vm99_vm1, %v927_v43  ;;  %730 = vmatmul.msk.f32.gmra.mxu1 %vm99_vm1, %v927_v43 }
  0x63   :  { %734 = vmatmul.msk.f32.gmra.mxu2 %vm99_vm1, %v927_v43  ;;  %738 = vmatmul.msk.f32.gmra.mxu3 %vm99_vm1, %v927_v43 }
  0x83   :  { %v1113_v33 = vpop.permute.xlu0 %86 }
  0x87   :  { %v175_v7 = vpop.f32.mrf.mxu0  ;;  %v201_v8 = vpop.f32.mrf.mxu1 }
  0x88   :  { %v176_v41 = vadd.f32 %v175_v7, %v1113_v33  ;;  %v202_v42 = vadd.f32 %v201_v8, %v1113_v33 }
  0x8a   :  { %v574_v52 = vmax.f32 %v176_v41, 0.0  ;;  %v575_v53 = vmax.f32 %v202_v42, 0.0 }
  0x8b   :  { %v1119_v38 = vpop.permute.xlu0 %91 }
  0x8e   :  { %v227_v9 = vpop.f32.mrf.mxu2  ;;  %v253_v10 = vpop.f32.mrf.mxu3 }
  0x8f   :  { %v178_v11 = vpop.f32.mrf.mxu0  ;;  %v204_v12 = vpop.f32.mrf.mxu1  ;;  %v228_v45 = vadd.f32 %v227_v9, %v1113_v33  ;;  %v254_v46 = vadd.f32 %v253_v10, %v1113_v33 }
  0x90   :  { %v1133_v47 = vpop.permute.xlu1 %96  ;;  %v179_v48 = vadd.f32 %v178_v11, %v1119_v38  ;;  %v205_v49 = vadd.f32 %v204_v12, %v1119_v38 }
  0x91   :  { %v576_v54 = vmax.f32 %v228_v45, 0.0  ;;  %v577_v55 = vmax.f32 %v254_v46, 0.0 }
  0x92   :  { %v590_v62 = vmax.f32 %v179_v48, 0.0  ;;  %v591_v63 = vmax.f32 %v205_v49, 0.0 }
  0x96   :  { %v230_v13 = vpop.f32.mrf.mxu2  ;;  %v256_v14 = vpop.f32.mrf.mxu3 }
  0x97   :  { %v181_v15 = vpop.f32.mrf.mxu0  ;;  %v207_v16 = vpop.f32.mrf.mxu1  ;;  %v1138_v50 = vadd.f32 %v230_v13, %v1119_v38  ;;  %v1141_v51 = vadd.f32 %v256_v14, %v1119_v38 }
  0x98   :  { %v1148_v60 = vadd.f32 %v181_v15, %v1133_v47  ;;  %v1151_v61 = vadd.f32 %v207_v16, %v1133_v47 }
  0x99   :  { %v592_v4 = vmax.f32 %v1138_v50, 0.0  ;;  %v593_v5 = vmax.f32 %v1141_v51, 0.0 }
  0x9a   :  { %v606_v16 = vmax.f32 %v1148_v60, 0.0 }
  0x9e   :  { %v1097_v17 = vpop.f32.mrf.mxu2  ;;  %v1099_v18 = vpop.f32.mrf.mxu3 }
  0x9f   :  { %v279_v19 = vpop.f32.mrf.mxu0  ;;  %v305_v20 = vpop.f32.mrf.mxu1 }
  0xa0   :  { %v280_v56 = vadd.f32 %v279_v19, %v1113_v33  ;;  %v306_v57 = vadd.f32 %v305_v20, %v1113_v33  ;;  %v607_v19 = vmax.f32 %v1151_v61, 0.0 }
  0xa2   :  { %v578_v10 = vmax.f32 %v280_v56, 0.0  ;;  %v579_v11 = vmax.f32 %v306_v57, 0.0 }
  0xa4   :  { %v622_v42 = vmax.f32 %v574_v52, %v578_v10  ;;  %v623_v45 = vmax.f32 %v575_v53, %v579_v11 }
  0xa6   :  { %v331_v21 = vpop.f32.mrf.mxu2  ;;  %v357_v22 = vpop.f32.mrf.mxu3 }
  0xa7   :  { %v282_v23 = vpop.f32.mrf.mxu0  ;;  %v308_v24 = vpop.f32.mrf.mxu1  ;;  %v332_v58 = vadd.f32 %v331_v21, %v1113_v33  ;;  %v358_v59 = vadd.f32 %v357_v22, %v1113_v33 }
  0xa8   :  { %v283_v6 = vadd.f32 %v282_v23, %v1119_v38  ;;  %v309_v7 = vadd.f32 %v308_v24, %v1119_v38  ;;  %v1169_v24 = vadd.f32 %v1097_v17, %v1133_v47 }
  0xa9   :  { %v580_v14 = vmax.f32 %v332_v58, 0.0  ;;  %v581_v15 = vmax.f32 %v358_v59, 0.0 }
  0xaa   :  { %v595_v41 = vmax.f32 %v309_v7, 0.0 }
  0xab   :  { %v624_v49 = vmax.f32 %v576_v54, %v580_v14  ;;  %v625_v56 = vmax.f32 %v577_v55, %v581_v15 }
  0xac   :  { %v627_v53 = vmax.f32 %v591_v63, %v595_v41 }
  0xae   :  { %v1101_v25 = vpop.f32.mrf.mxu2  ;;  %v1103_v26 = vpop.f32.mrf.mxu3 }
  0xaf   :  { %v1105_v27 = vpop.f32.mrf.mxu0  ;;  %v1107_v28 = vpop.f32.mrf.mxu1 }
  0xb6   :  { %v1109_v29 = vpop.f32.mrf.mxu2  ;;  %v1111_v30 = vpop.f32.mrf.mxu3 }
  0xb7   :  { %v383_v31 = vpop.f32.mrf.mxu0  ;;  %v409_v32 = vpop.f32.mrf.mxu1 }
  0xb8   :  { %v384_v0 = vadd.f32 %v383_v31, %v1113_v33  ;;  %v410_v1 = vadd.f32 %v409_v32, %v1113_v33  ;;  %v1173_v31 = vadd.f32 %v1099_v18, %v1133_v47  ;;  %v594_v32 = vmax.f32 %v283_v6, 0.0 }
  0xba   :  { %v582_v20 = vmax.f32 %v384_v0, 0.0  ;;  %v583_v21 = vmax.f32 %v410_v1, 0.0  ;;  %v626_v52 = vmax.f32 %v590_v62, %v594_v32 }
  0xbe   :  { %v435_v34 = vpop.f32.mrf.mxu2  ;;  %v461_v35 = vpop.f32.mrf.mxu3 }
  0xbf   :  { %v1115_v36 = vpop.f32.mrf.mxu0  ;;  %v1117_v37 = vpop.f32.mrf.mxu1  ;;  %v436_v57 = vadd.f32 %v435_v34, %v1113_v33  ;;  %v462_v58 = vadd.f32 %v461_v35, %v1113_v33  ;;  %v335_v35 = vadd.f32 %v1101_v25, %v1119_v38 }
  0xc0   :  { %v387_v17 = vadd.f32 %v1115_v36, %v1119_v38  ;;  %v413_v59 = vadd.f32 %v1117_v37, %v1119_v38  ;;  %v361_v36 = vadd.f32 %v1103_v26, %v1119_v38 }
  0xc1   :  { %v584_v63 = vmax.f32 %v436_v57, 0.0 }
  0xc2   :  { %v598_v25 = vmax.f32 %v387_v17, 0.0  ;;  %v599_v10 = vmax.f32 %v413_v59, 0.0 }
  0xc6   :  { %v1121_v39 = vpop.f32.mrf.mxu2  ;;  %v1123_v40 = vpop.f32.mrf.mxu3 }
  0xc7   :  { %v1127_v43 = vpop.f32.mrf.mxu0  ;;  %v1129_v44 = vpop.f32.mrf.mxu1  ;;  %v439_v32 = vadd.f32 %v1121_v39, %v1119_v38  ;;  %v465_v41 = vadd.f32 %v1123_v40, %v1119_v38 }
  0xce   :  { %v1155_v2 = vpop.f32.mrf.mxu2  ;;  %v1157_v3 = vpop.f32.mrf.mxu3 }
  0xcf   :  { %v487_v8 = vpop.f32.mrf.mxu0  ;;  %v513_v9 = vpop.f32.mrf.mxu1 }
  0xd0   :  { %v488_v12 = vadd.f32 %v487_v8, %v1113_v33  ;;  %v514_v13 = vadd.f32 %v513_v9, %v1113_v33  ;;  %v585_v8 = vmax.f32 %v462_v58, 0.0 }
  0xd2   :  { %v586_v22 = vmax.f32 %v488_v12, 0.0  ;;  %v587_v23 = vmax.f32 %v514_v13, 0.0  ;;  %v286_v12 = vadd.f32 %v1105_v27, %v1133_v47  ;;  %v312_v13 = vadd.f32 %v1107_v28, %v1133_v47 }
  0xd3   :  { %v390_v27 = vadd.f32 %v1127_v43, %v1133_v47  ;;  %v416_v28 = vadd.f32 %v1129_v44, %v1133_v47 }
  0xd4   :  { %v634_v46 = vmax.f32 %v582_v20, %v586_v22  ;;  %v635_v48 = vmax.f32 %v583_v21, %v587_v23  ;;  %v596_v20 = vmax.f32 %v335_v35, 0.0  ;;  %v597_v21 = vmax.f32 %v361_v36, 0.0 }
  0xd5   :  { %v610_v17 = vmax.f32 %v286_v12, 0.0  ;;  %v611_v59 = vmax.f32 %v312_v13, 0.0 }
  0xd6   :  { %v646_v18 = vmax.f32 %v622_v42, %v634_v46  ;;  %v647_v0 = vmax.f32 %v623_v45, %v635_v48  ;;  %v539_v1 = vpop.f32.mrf.mxu2  ;;  %v565_v6 = vpop.f32.mrf.mxu3  ;;  %v628_v43 = vmax.f32 %v592_v4, %v596_v20  ;;  %v629_v44 = vmax.f32 %v593_v5, %v597_v21 }
  0xd7   :  { %v540_v7 = vadd.f32 %v539_v1, %v1113_v33  ;;  %v566_v54 = vadd.f32 %v565_v6, %v1113_v33  ;;  %v490_v55 = vpop.f32.mrf.mxu0  ;;  %v516_v34 = vpop.f32.mrf.mxu1  ;;  %v600_v1 = vmax.f32 %v439_v32, 0.0  ;;  %v601_v6 = vmax.f32 %v465_v41, 0.0 }
  0xd8   :  { %658 = vst [vmem:[%s1264_s3] sm:$0xff] %v646_v18  ;;  %v491_v37 = vadd.f32 %v490_v55, %v1119_v38  ;;  %v517_v62 = vadd.f32 %v516_v34, %v1119_v38  ;;  %v614_v4 = vmax.f32 %v390_v27, 0.0  ;;  %v630_v34 = vmax.f32 %v606_v16, %v610_v17 }
  0xd9   :  { %659 = vst [vmem:[%s1264_s3 + $0x8] sm:$0xff] %v647_v0  ;;  %v588_v33 = vmax.f32 %v540_v7, 0.0  ;;  %v589_v9 = vmax.f32 %v566_v54, 0.0  ;;  %v364_v7 = vadd.f32 %v1111_v30, %v1133_v47  ;;  %v631_v35 = vmax.f32 %v607_v19, %v611_v59 }
  0xda   :  { %v602_v11 = vmax.f32 %v491_v37, 0.0  ;;  %v603_v26 = vmax.f32 %v517_v62, 0.0  ;;  %v442_v62 = vadd.f32 %v1155_v2, %v1133_v47  ;;  %v608_v2 = vmax.f32 %v1169_v24, 0.0 }
  0xdb   :  { %v636_v14 = vmax.f32 %v584_v63, %v588_v33  ;;  %v637_v15 = vmax.f32 %v585_v8, %v589_v9  ;;  %v468_v63 = vadd.f32 %v1157_v3, %v1133_v47  ;;  %v613_v60 = vmax.f32 %v364_v7, 0.0 }
  0xdc   :  { %v638_v22 = vmax.f32 %v598_v25, %v602_v11  ;;  %v639_v23 = vmax.f32 %v599_v10, %v603_v26  ;;  %v609_v3 = vmax.f32 %v1173_v31, 0.0  ;;  %v616_v19 = vmax.f32 %v442_v62, 0.0 }
  0xdd   :  { %v648_v42 = vmax.f32 %v624_v49, %v636_v14  ;;  %v649_v45 = vmax.f32 %v625_v56, %v637_v15  ;;  %v617_v11 = vmax.f32 %v468_v63, 0.0 }
  0xde   :  { %v650_v46 = vmax.f32 %v626_v52, %v638_v22  ;;  %v651_v48 = vmax.f32 %v627_v53, %v639_v23  ;;  %v542_v57 = vpop.f32.mrf.mxu2  ;;  %v568_v58 = vpop.f32.mrf.mxu3  ;;  %v615_v52 = vmax.f32 %v416_v28, 0.0  ;;  %v338_v53 = vadd.f32 %v1109_v29, %v1133_v47 }
  0xdf   :  { %739 = vst [vmem:[%s1264_s3 + $0x30] sm:$0xff] %v648_v42  ;;  %v543_v39 = vadd.f32 %v542_v57, %v1119_v38  ;;  %v569_v40 = vadd.f32 %v568_v58, %v1119_v38  ;;  %v493_v49 = vpop.f32.mrf.mxu0  ;;  %v519_v56 = vpop.f32.mrf.mxu1  ;;  %v633_v24 = vmax.f32 %v609_v3, %v613_v60 }
  0xe0   :  { %740 = vst [vmem:[%s1264_s3 + $0x38] sm:$0xff] %v649_v45  ;;  %v494_v18 = vadd.f32 %v493_v49, %v1133_v47  ;;  %v520_v0 = vadd.f32 %v519_v56, %v1133_v47  ;;  %v612_v10 = vmax.f32 %v338_v53, 0.0 }
  0xe1   :  { %660 = vst [vmem:[%s1264_s3 + $0x10] sm:$0xff] %v650_v46  ;;  %v604_v38 = vmax.f32 %v543_v39, 0.0  ;;  %v605_v50 = vmax.f32 %v569_v40, 0.0 }
  0xe2   :  { %661 = vst [vmem:[%s1264_s3 + $0x18] sm:$0xff] %v651_v48  ;;  %v618_v51 = vmax.f32 %v494_v18, 0.0  ;;  %v619_v5 = vmax.f32 %v520_v0, 0.0 }
  0xe3   :  { %v640_v54 = vmax.f32 %v600_v1, %v604_v38  ;;  %v641_v55 = vmax.f32 %v601_v6, %v605_v50 }
  0xe4   :  { %v642_v36 = vmax.f32 %v614_v4, %v618_v51  ;;  %v643_v37 = vmax.f32 %v615_v52, %v619_v5 }
  0xe5   :  { %v652_v29 = vmax.f32 %v628_v43, %v640_v54  ;;  %v653_v8 = vmax.f32 %v629_v44, %v641_v55 }
  0xe6   :  { %v654_v33 = vmax.f32 %v630_v34, %v642_v36  ;;  %v655_v30 = vmax.f32 %v631_v35, %v643_v37  ;;  %v545_v9 = vpop.f32.mrf.mxu2  ;;  %v571_v25 = vpop.f32.mrf.mxu3 }
  0xe7   :  { %741 = vst [vmem:[%s1264_s3 + $0x40] sm:$0xff] %v652_v29  ;;  %v546_v61 = vadd.f32 %v545_v9, %v1133_v47  ;;  %v572_v16 = vadd.f32 %v571_v25, %v1133_v47  ;;  %v632_v47 = vmax.f32 %v608_v2, %v612_v10 }
  0xe8   :  { %742 = vst [vmem:[%s1264_s3 + $0x48] sm:$0xff] %v653_v8 }
  0xe9   :  { %662 = vst [vmem:[%s1264_s3 + $0x20] sm:$0x3] %v654_v33  ;;  %v620_v26 = vmax.f32 %v546_v61, 0.0  ;;  %v621_v12 = vmax.f32 %v572_v16, 0.0 }
  0xea   :  { %663 = vst [vmem:[%s1264_s3 + $0x28] sm:$0x3] %v655_v30 }
  0xeb   :  { %v644_v13 = vmax.f32 %v616_v19, %v620_v26  ;;  %v645_v31 = vmax.f32 %v617_v11, %v621_v12 }
  0xed   :  { %v656_v14 = vmax.f32 %v632_v47, %v644_v13  ;;  %v657_v15 = vmax.f32 %v633_v24, %v645_v31 }
  0xef   :  { %743 = vst [vmem:[%s1264_s3 + $0x50] sm:$0x3] %v656_v14 }
  0xf0   :  { %744 = vst [vmem:[%s1264_s3 + $0x58] sm:$0x3] %v657_v15 }

// kernel: simple_cnn_forward.3
= control target key start
LH: loop header
LB: loop body
LE: loop exit
PB: predicated region body
PF: predicated region fallthrough
CT: control target
= control target key end

     0   :  { %s5470_s0 = inlined_call_operand.vmem [shape: f32[2,4608], index: 0, kind: input, shape index: {}]   ;;  %s5471_s1 = inlined_call_operand.vmem [shape: bf16[4608,64], index: 1, kind: input, shape index: {}]   ;;  %s5472_s2 = inlined_call_operand.vmem [shape: f32[1,64], index: 2, kind: input, shape index: {}]   ;;  %s5473_s3 = inlined_call_operand.vmem [shape: f32[64,10], index: 3, kind: input, shape index: {}]   ;;  %s5474_s4 = inlined_call_operand.vmem [shape: f32[1,10], index: 4, kind: input, shape index: {}]   ;;  %s5475_s5 = inlined_call_operand.hbm [shape: f32[2,10], index: 5, kind: output, shape index: {}]  }
   0x1   :  { %v4148_v0 = vld [vmem:[%s5471_s1 + $0x38] sm:$0xff]  ;;  %v4147_v4 = vld [vmem:[%s5471_s1 + $0x30] sm:$0xff]  ;;  %v4146_v8 = vld [vmem:[%s5471_s1 + $0x28] sm:$0xff] }
   0x2   :  { %v4156_v1 = vld [vmem:[%s5471_s1 + $0x78] sm:$0xff]  ;;  %2465 = vmatpush.bf16.msra.mxu0 %v4148_v0  ;;  %v4155_v5 = vld [vmem:[%s5471_s1 + $0x70] sm:$0xff]  ;;  %v4154_v9 = vld [vmem:[%s5471_s1 + $0x68] sm:$0xff] }
   0x3   :  { %v4164_v2 = vld [vmem:[%s5471_s1 + $0xb8] sm:$0xff]  ;;  %2478 = vmatpush.bf16.msra.mxu1 %v4156_v1  ;;  %v4163_v6 = vld [vmem:[%s5471_s1 + $0xb0] sm:$0xff]  ;;  %v4162_v10 = vld [vmem:[%s5471_s1 + $0xa8] sm:$0xff] }
   0x4   :  { %v4172_v3 = vld [vmem:[%s5471_s1 + $0xf8] sm:$0xff]  ;;  %2491 = vmatpush.bf16.msra.mxu2 %v4164_v2  ;;  %v4171_v7 = vld [vmem:[%s5471_s1 + $0xf0] sm:$0xff]  ;;  %v4170_v11 = vld [vmem:[%s5471_s1 + $0xe8] sm:$0xff] }
   0x5   :  { %2504 = vmatpush.bf16.msra.mxu3 %v4172_v3  ;;  %v4145_v12 = vld [vmem:[%s5471_s1 + $0x20] sm:$0xff]  ;;  %v4144_v16 = vld [vmem:[%s5471_s1 + $0x18] sm:$0xff]  ;;  %v4143_v20 = vld [vmem:[%s5471_s1 + $0x10] sm:$0xff] }
   0x6   :  { %2466 = vmatpush.bf16.msra.mxu0 %v4147_v4  ;;  %v4153_v13 = vld [vmem:[%s5471_s1 + $0x60] sm:$0xff]  ;;  %v4152_v17 = vld [vmem:[%s5471_s1 + $0x58] sm:$0xff]  ;;  %v4151_v21 = vld [vmem:[%s5471_s1 + $0x50] sm:$0xff] }
   0x7   :  { %2479 = vmatpush.bf16.msra.mxu1 %v4155_v5  ;;  %v4161_v14 = vld [vmem:[%s5471_s1 + $0xa0] sm:$0xff]  ;;  %v4160_v18 = vld [vmem:[%s5471_s1 + $0x98] sm:$0xff]  ;;  %v4159_v23 = vld [vmem:[%s5471_s1 + $0x90] sm:$0xff] }
   0x8   :  { %2492 = vmatpush.bf16.msra.mxu2 %v4163_v6  ;;  %v4169_v15 = vld [vmem:[%s5471_s1 + $0xe0] sm:$0xff]  ;;  %v4168_v19 = vld [vmem:[%s5471_s1 + $0xd8] sm:$0xff]  ;;  %v4167_v24 = vld [vmem:[%s5471_s1 + $0xd0] sm:$0xff] }
   0x9   :  { %2505 = vmatpush.bf16.msra.mxu3 %v4171_v7  ;;  %v21_v22 = vld [vmem:[%s5470_s0] sm:$0xff] }
   0xa   :  { %2467 = vmatpush.bf16.msra.mxu0 %v4146_v8  ;;  %39 = vst [vmem:[#allocation1] ss:$4 sm:$0xff] %v21_v22 }
   0xb   :  { %2480 = vmatpush.bf16.msra.mxu1 %v4154_v9 }
   0xc   :  { %2493 = vmatpush.bf16.msra.mxu2 %v4162_v10 }
   0xd   :  { %2506 = vmatpush.bf16.msra.mxu3 %v4170_v11 }
   0xe   :  { %2468 = vmatpush.bf16.msra.mxu0 %v4145_v12 }
   0xf   :  { %2481 = vmatpush.bf16.msra.mxu1 %v4153_v13 }
  0x10   :  { %2494 = vmatpush.bf16.msra.mxu2 %v4161_v14 }
  0x11   :  { %2507 = vmatpush.bf16.msra.mxu3 %v4169_v15 }
  0x12   :  { %2469 = vmatpush.bf16.msra.mxu0 %v4144_v16 }
  0x13   :  { %2482 = vmatpush.bf16.msra.mxu1 %v4152_v17 }
  0x14   :  { %2495 = vmatpush.bf16.msra.mxu2 %v4160_v18 }
  0x15   :  { %2508 = vmatpush.bf16.msra.mxu3 %v4168_v19 }
  0x16   :  { %10 = vsyncpa [#allocation3], 0  ;;  %2470 = vmatpush.bf16.msra.mxu0 %v4143_v20  ;;  %v4142_v25 = vld [vmem:[%s5471_s1 + $0x8] sm:$0xff]  ;;  %v4141_v29 = vld [vmem:[%s5471_s1] sm:$0xff]  ;;  %vm2946_vm0 = vcmask 523264   ;;  %s4458_s16 = smov [#allocation2]  }
  0x17   :  { %2483 = vmatpush.bf16.msra.mxu1 %v4151_v21  ;;  %v4150_v26 = vld [vmem:[%s5471_s1 + $0x48] sm:$0xff]  ;;  %v4149_v30 = vld [vmem:[%s5471_s1 + $0x40] sm:$0xff]  ;;  %v44_v32 = vld.sshfl [vmem:[#allocation1 + $0x10] sm:$0xff pattern:$0x73625140]  ;;  %s2977_s17 = sshll.u32 %s4458_s16, 4  ;;  %s2978_s17 = int_to_ptr.vmem [resolvable:$true] %s2977_s17 }
  0x18   :  { %2496 = vmatpush.bf16.msra.mxu2 %v4159_v23  ;;  %v4158_v27 = vld [vmem:[%s5471_s1 + $0x88] sm:$0xff]  ;;  %v4157_v31 = vld [vmem:[%s5471_s1 + $0x80] sm:$0xff]  ;;  %v23_v35 = vld [vmem:[%s5470_s0 + $0x10] sm:$0xff]  ;;  %v123_v43 = vpack.c.bf16 %v44_v32, %v44_v32  ;;  %s2979_s20 = sshll.u32 %s5475_s5, 4  ;;  %vm2970_vm1 = vcmask 74752   ;;  %s2980_s20 = int_to_ptr.hbm [resolvable:$true] %s2979_s20 }
  0x19   :  { %2509 = vmatpush.bf16.msra.mxu3 %v4167_v24  ;;  %v4166_v28 = vld [vmem:[%s5471_s1 + $0xc8] sm:$0xff]  ;;  %v4165_v33 = vld [vmem:[%s5471_s1 + $0xc0] sm:$0xff]  ;;  %v45_v36 = vld.sshfl [vmem:[#allocation1 + $0x18] sm:$0xff pattern:$0x73625140] }
  0x1a   :  { %2471 = vmatpush.bf16.msra.mxu0 %v4142_v25  ;;  %v42_v34 = vld.sshfl [vmem:[#allocation1] sm:$0xff pattern:$0x73625140]  ;;  %v43_v37 = vld.sshfl [vmem:[#allocation1 + $0x8] sm:$0xff pattern:$0x73625140]  ;;  %v124_v45 = vpack.c.bf16 %v45_v36, %v45_v36 }
  0x1b   :  { %2484 = vmatpush.bf16.msra.mxu1 %v4150_v26  ;;  %v4180_v38 = vld [vmem:[%s5471_s1 + $0x138] sm:$0xff]  ;;  %50 = vst [vmem:[#allocation1] ss:$4 sm:$0xff] %v23_v35  ;;  %v22_v42 = vld [vmem:[%s5470_s0 + $0x8] sm:$0xff]  ;;  %v121_v44 = vpack.c.bf16 %v42_v34, %v42_v34  ;;  %v122_v46 = vpack.c.bf16 %v43_v37, %v43_v37  ;;  %v4179_v47 = vld [vmem:[%s5471_s1 + $0x130] sm:$0xff] }
  0x1c   :  { %2497 = vmatpush.bf16.msra.mxu2 %v4158_v27  ;;  %v4188_v39 = vld [vmem:[%s5471_s1 + $0x178] sm:$0xff]  ;;  %41 = vst [vmem:[#allocation1 + $0x20] ss:$4 sm:$0xff] %v22_v42  ;;  %v4187_v48 = vld [vmem:[%s5471_s1 + $0x170] sm:$0xff]  ;;  %v4178_v51 = vld [vmem:[%s5471_s1 + $0x128] sm:$0xff] }
  0x1d   :  { %2510 = vmatpush.bf16.msra.mxu3 %v4166_v28  ;;  %v4196_v40 = vld [vmem:[%s5471_s1 + $0x1b8] sm:$0xff]  ;;  %v4195_v49 = vld [vmem:[%s5471_s1 + $0x1b0] sm:$0xff]  ;;  %v4186_v52 = vld [vmem:[%s5471_s1 + $0x168] sm:$0xff] }
  0x1e   :  { %v4204_v41 = vld [vmem:[%s5471_s1 + $0x1f8] sm:$0xff]  ;;  %2472 = vmatpush.bf16.msra.mxu0 %v4141_v29  ;;  %v4203_v50 = vld [vmem:[%s5471_s1 + $0x1f0] sm:$0xff]  ;;  %v4194_v53 = vld [vmem:[%s5471_s1 + $0x1a8] sm:$0xff] }
  0x1f   :  { %2485 = vmatpush.bf16.msra.mxu1 %v4149_v30  ;;  %v4202_v54 = vld [vmem:[%s5471_s1 + $0x1e8] sm:$0xff]  ;;  %v4177_v55 = vld [vmem:[%s5471_s1 + $0x120] sm:$0xff]  ;;  %v24_v59 = vld [vmem:[%s5470_s0 + $0x18] sm:$0xff] }
  0x20   :  { %2498 = vmatpush.bf16.msra.mxu2 %v4157_v31  ;;  %v4185_v57 = vld [vmem:[%s5471_s1 + $0x160] sm:$0xff]  ;;  %v4176_v0 = vld [vmem:[%s5471_s1 + $0x118] sm:$0xff]  ;;  %v4175_v4 = vld [vmem:[%s5471_s1 + $0x110] sm:$0xff] }
  0x21   :  { %2511 = vmatpush.bf16.msra.mxu3 %v4165_v33  ;;  %2473 = vmatmul.bf16.vlgmr.msra.gmra.mxu0 %v121_v44  ;;  %v4193_v62 = vld [vmem:[%s5471_s1 + $0x1a0] sm:$0xff]  ;;  %v4184_v1 = vld [vmem:[%s5471_s1 + $0x158] sm:$0xff]  ;;  %v4183_v5 = vld [vmem:[%s5471_s1 + $0x150] sm:$0xff] }
  0x22   :  { %2517 = vmatpush.bf16.msrb.mxu0 %v4180_v38  ;;  %2486 = vmatmul.bf16.vlgmr.msra.gmra.mxu1 %v122_v46  ;;  %v4201_v63 = vld [vmem:[%s5471_s1 + $0x1e0] sm:$0xff]  ;;  %v4192_v2 = vld [vmem:[%s5471_s1 + $0x198] sm:$0xff]  ;;  %v4191_v6 = vld [vmem:[%s5471_s1 + $0x190] sm:$0xff] }
  0x23   :  { %2530 = vmatpush.bf16.msrb.mxu1 %v4188_v39  ;;  %2499 = vmatmul.bf16.vlgmr.msra.gmra.mxu2 %v123_v43  ;;  %v4633_v56 = vld.sshfl [vmem:[#allocation1 + $0x30] sm:$0xff pattern:$0x73625140]  ;;  %v4638_v58 = vld.sshfl [vmem:[#allocation1 + $0x20] sm:$0xff pattern:$0x73625140] }
  0x24   :  { %2543 = vmatpush.bf16.msrb.mxu2 %v4196_v40  ;;  %2512 = vmatmul.bf16.vlgmr.msra.gmra.mxu3 %v124_v45  ;;  %v4643_v60 = vld.sshfl [vmem:[#allocation1 + $0x38] sm:$0xff pattern:$0x73625140]  ;;  %v4645_v61 = vld.sshfl [vmem:[#allocation1 + $0x28] sm:$0xff pattern:$0x73625140]  ;;  %v127_v21 = vpack.c.bf16 %v4633_v56, %v4633_v56  ;;  %v125_v22 = vpack.c.bf16 %v4638_v58, %v4638_v58 }
  0x25   :  { %2556 = vmatpush.bf16.msrb.mxu3 %v4204_v41  ;;  %51 = vst [vmem:[#allocation1 + $0x20] ss:$4 sm:$0xff] %v24_v59  ;;  %v4200_v3 = vld [vmem:[%s5471_s1 + $0x1d8] sm:$0xff]  ;;  %v4199_v7 = vld [vmem:[%s5471_s1 + $0x1d0] sm:$0xff]  ;;  %v4174_v8 = vld [vmem:[%s5471_s1 + $0x108] sm:$0xff]  ;;  %v128_v25 = vpack.c.bf16 %v4643_v60, %v4643_v60  ;;  %v126_v26 = vpack.c.bf16 %v4645_v61, %v4645_v61 }
  0x26   :  { %2518 = vmatpush.bf16.msrb.mxu0 %v4179_v47  ;;  %v4182_v9 = vld [vmem:[%s5471_s1 + $0x148] sm:$0xff]  ;;  %v4173_v12 = vld [vmem:[%s5471_s1 + $0x100] sm:$0xff]  ;;  %v4212_v16 = vld [vmem:[%s5471_s1 + $0x238] sm:$0xff] }
  0x27   :  { %2531 = vmatpush.bf16.msrb.mxu1 %v4187_v48  ;;  %v4190_v10 = vld [vmem:[%s5471_s1 + $0x188] sm:$0xff]  ;;  %v4181_v13 = vld [vmem:[%s5471_s1 + $0x140] sm:$0xff]  ;;  %v4220_v17 = vld [vmem:[%s5471_s1 + $0x278] sm:$0xff] }
  0x28   :  { %2544 = vmatpush.bf16.msrb.mxu2 %v4195_v49  ;;  %v4198_v11 = vld [vmem:[%s5471_s1 + $0x1c8] sm:$0xff]  ;;  %v4189_v14 = vld [vmem:[%s5471_s1 + $0x180] sm:$0xff]  ;;  %v4228_v18 = vld [vmem:[%s5471_s1 + $0x2b8] sm:$0xff] }
  0x29   :  { %2557 = vmatpush.bf16.msrb.mxu3 %v4203_v50  ;;  %v4197_v15 = vld [vmem:[%s5471_s1 + $0x1c0] sm:$0xff]  ;;  %v4236_v19 = vld [vmem:[%s5471_s1 + $0x2f8] sm:$0xff]  ;;  %v4211_v20 = vld [vmem:[%s5471_s1 + $0x230] sm:$0xff] }
  0x2a   :  { %2519 = vmatpush.bf16.msrb.mxu0 %v4178_v51  ;;  %v4219_v23 = vld [vmem:[%s5471_s1 + $0x270] sm:$0xff]  ;;  %v4730_v27 = vld.sshfl [vmem:[#allocation1] sm:$0xff pattern:$0x73625140]  ;;  %v4210_v33 = vld [vmem:[%s5471_s1 + $0x228] sm:$0xff] }
  0x2b   :  { %2532 = vmatpush.bf16.msrb.mxu1 %v4186_v52  ;;  %v4227_v24 = vld [vmem:[%s5471_s1 + $0x2b0] sm:$0xff]  ;;  %v4734_v29 = vld.sshfl [vmem:[#allocation1 + $0x8] sm:$0xff pattern:$0x73625140]  ;;  %v25_v31 = vld [vmem:[%s5470_s0 + $0x20] sm:$0xff]  ;;  %v129_v61 = vpack.c.bf16 %v4730_v27, %v4730_v27 }
  0x2c   :  { %2545 = vmatpush.bf16.msrb.mxu2 %v4194_v53  ;;  %v4732_v28 = vld.sshfl [vmem:[#allocation1 + $0x10] sm:$0xff pattern:$0x73625140]  ;;  %v4742_v32 = vld.sshfl [vmem:[#allocation1 + $0x18] sm:$0xff pattern:$0x73625140] }
  0x2d   :  { %2558 = vmatpush.bf16.msrb.mxu3 %v4202_v54  ;;  %v4235_v30 = vld [vmem:[%s5471_s1 + $0x2f0] sm:$0xff]  ;;  %60 = vst [vmem:[#allocation1] ss:$4 sm:$0xff] %v25_v31  ;;  %v4218_v34 = vld [vmem:[%s5471_s1 + $0x268] sm:$0xff]  ;;  %v4209_v37 = vld [vmem:[%s5471_s1 + $0x220] sm:$0xff] }
  0x2e   :  { %2520 = vmatpush.bf16.msrb.mxu0 %v4177_v55  ;;  %v4226_v35 = vld [vmem:[%s5471_s1 + $0x2a8] sm:$0xff]  ;;  %v4217_v38 = vld [vmem:[%s5471_s1 + $0x260] sm:$0xff]  ;;  %v4208_v41 = vld [vmem:[%s5471_s1 + $0x218] sm:$0xff] }
  0x2f   :  { %2533 = vmatpush.bf16.msrb.mxu1 %v4185_v57  ;;  %v4234_v36 = vld [vmem:[%s5471_s1 + $0x2e8] sm:$0xff]  ;;  %v4225_v39 = vld [vmem:[%s5471_s1 + $0x2a0] sm:$0xff]  ;;  %v4216_v42 = vld [vmem:[%s5471_s1 + $0x258] sm:$0xff] }
  0x30   :  { %2546 = vmatpush.bf16.msrb.mxu2 %v4193_v62  ;;  %v4233_v40 = vld [vmem:[%s5471_s1 + $0x2e0] sm:$0xff]  ;;  %v4224_v43 = vld [vmem:[%s5471_s1 + $0x298] sm:$0xff]  ;;  %v4207_v45 = vld [vmem:[%s5471_s1 + $0x210] sm:$0xff]  ;;  %v131_v62 = vpack.c.bf16 %v4732_v28, %v4732_v28 }
  0x31   :  { %2559 = vmatpush.bf16.msrb.mxu3 %v4201_v63  ;;  %v4232_v44 = vld [vmem:[%s5471_s1 + $0x2d8] sm:$0xff]  ;;  %v4215_v46 = vld [vmem:[%s5471_s1 + $0x250] sm:$0xff]  ;;  %v4206_v49 = vld [vmem:[%s5471_s1 + $0x208] sm:$0xff] }
  0x32   :  { %2521 = vmatpush.bf16.msrb.mxu0 %v4176_v0  ;;  %v4223_v47 = vld [vmem:[%s5471_s1 + $0x290] sm:$0xff]  ;;  %v4214_v50 = vld [vmem:[%s5471_s1 + $0x248] sm:$0xff]  ;;  %v4205_v53 = vld [vmem:[%s5471_s1 + $0x200] sm:$0xff]  ;;  %v130_v0 = vpack.c.bf16 %v4734_v29, %v4734_v29 }
  0x33   :  { %2534 = vmatpush.bf16.msrb.mxu1 %v4184_v1  ;;  %v4231_v48 = vld [vmem:[%s5471_s1 + $0x2d0] sm:$0xff]  ;;  %v4222_v51 = vld [vmem:[%s5471_s1 + $0x288] sm:$0xff]  ;;  %v4213_v54 = vld [vmem:[%s5471_s1 + $0x240] sm:$0xff]  ;;  %v132_v1 = vpack.c.bf16 %v4742_v32, %v4742_v32 }
  0x34   :  { %2547 = vmatpush.bf16.msrb.mxu2 %v4192_v2  ;;  %v4230_v52 = vld [vmem:[%s5471_s1 + $0x2c8] sm:$0xff]  ;;  %v4221_v55 = vld [vmem:[%s5471_s1 + $0x280] sm:$0xff]  ;;  %v4244_v57 = vld [vmem:[%s5471_s1 + $0x338] sm:$0xff] }
  0x35   :  { %2560 = vmatpush.bf16.msrb.mxu3 %v4200_v3  ;;  %v4229_v56 = vld [vmem:[%s5471_s1 + $0x2c0] sm:$0xff]  ;;  %v4252_v58 = vld [vmem:[%s5471_s1 + $0x378] sm:$0xff]  ;;  %v4243_v63 = vld [vmem:[%s5471_s1 + $0x330] sm:$0xff] }
  0x36   :  { %2522 = vmatpush.bf16.msrb.mxu0 %v4175_v4  ;;  %v4260_v59 = vld [vmem:[%s5471_s1 + $0x3b8] sm:$0xff]  ;;  %v4251_v2 = vld [vmem:[%s5471_s1 + $0x370] sm:$0xff]  ;;  %v4845_v4 = vld.sshfl [vmem:[#allocation1 + $0x20] sm:$0xff pattern:$0x73625140] }
  0x37   :  { %2535 = vmatpush.bf16.msrb.mxu1 %v4183_v5  ;;  %v4268_v60 = vld [vmem:[%s5471_s1 + $0x3f8] sm:$0xff]  ;;  %v4259_v3 = vld [vmem:[%s5471_s1 + $0x3b0] sm:$0xff]  ;;  %v4246_v27 = vld [vmem:[%s5471_s1 + $0x348] sm:$0xff] }
  0x38   :  { %2548 = vmatpush.bf16.msrb.mxu2 %v4191_v6  ;;  %v4847_v5 = vld.sshfl [vmem:[#allocation1 + $0x30] sm:$0xff pattern:$0x73625140]  ;;  %v4849_v6 = vld.sshfl [vmem:[#allocation1 + $0x28] sm:$0xff pattern:$0x73625140] }
  0x39   :  { %2561 = vmatpush.bf16.msrb.mxu3 %v4199_v7  ;;  %v4267_v7 = vld [vmem:[%s5471_s1 + $0x3f0] sm:$0xff]  ;;  %v4254_v28 = vld [vmem:[%s5471_s1 + $0x388] sm:$0xff]  ;;  %v4245_v31 = vld [vmem:[%s5471_s1 + $0x340] sm:$0xff] }
  0x3a   :  { %2523 = vmatpush.bf16.msrb.mxu0 %v4174_v8  ;;  %v26_v8 = vld [vmem:[%s5470_s0 + $0x28] sm:$0xff]  ;;  %v4253_v32 = vld [vmem:[%s5471_s1 + $0x380] sm:$0xff] }
  0x3b   :  { %2536 = vmatpush.bf16.msrb.mxu1 %v4182_v9  ;;  %v4857_v9 = vld.sshfl [vmem:[#allocation1 + $0x38] sm:$0xff pattern:$0x73625140]  ;;  %v4262_v29 = vld [vmem:[%s5471_s1 + $0x3c8] sm:$0xff] }
  0x3c   :  { %2549 = vmatpush.bf16.msrb.mxu2 %v4190_v10  ;;  %61 = vst [vmem:[#allocation1 + $0x20] ss:$4 sm:$0xff] %v26_v8  ;;  %v4242_v10 = vld [vmem:[%s5471_s1 + $0x328] sm:$0xff]  ;;  %v62_v8 = vld.sshfl [vmem:[#allocation1] sm:$0xff pattern:$0x73625140] }
  0x3d   :  { %2562 = vmatpush.bf16.msrb.mxu3 %v4198_v11  ;;  %v4250_v11 = vld [vmem:[%s5471_s1 + $0x368] sm:$0xff] }
  0x3e   :  { %2524 = vmatpush.bf16.msrb.mxu0 %v4173_v12  ;;  %v4258_v12 = vld [vmem:[%s5471_s1 + $0x3a8] sm:$0xff] }
  0x3f   :  { %2537 = vmatpush.bf16.msrb.mxu1 %v4181_v13  ;;  %v4266_v13 = vld [vmem:[%s5471_s1 + $0x3e8] sm:$0xff] }
  0x40   :  { %2550 = vmatpush.bf16.msrb.mxu2 %v4189_v14  ;;  %v4241_v14 = vld [vmem:[%s5471_s1 + $0x320] sm:$0xff] }
  0x41   :  { %2563 = vmatpush.bf16.msrb.mxu3 %v4197_v15  ;;  %2525 = vmatmul.bf16.vlgmr.msrb.gmra.mxu0 %v125_v22  ;;  %v4249_v15 = vld [vmem:[%s5471_s1 + $0x360] sm:$0xff]  ;;  %v4239_v22 = vld [vmem:[%s5471_s1 + $0x310] sm:$0xff] }
  0x42   :  { %2569 = vmatpush.bf16.msra.mxu0 %v4212_v16  ;;  %2538 = vmatmul.bf16.vlgmr.msrb.gmra.mxu1 %v126_v26  ;;  %v4257_v16 = vld [vmem:[%s5471_s1 + $0x3a0] sm:$0xff]  ;;  %v4238_v26 = vld [vmem:[%s5471_s1 + $0x308] sm:$0xff] }
  0x43   :  { %2582 = vmatpush.bf16.msra.mxu1 %v4220_v17  ;;  %2551 = vmatmul.bf16.vlgmr.msrb.gmra.mxu2 %v127_v21  ;;  %v4265_v17 = vld [vmem:[%s5471_s1 + $0x3e0] sm:$0xff]  ;;  %v4264_v21 = vld [vmem:[%s5471_s1 + $0x3d8] sm:$0xff] }
  0x44   :  { %2595 = vmatpush.bf16.msra.mxu2 %v4228_v18  ;;  %2564 = vmatmul.bf16.vlgmr.msrb.gmra.mxu3 %v128_v25  ;;  %v4240_v18 = vld [vmem:[%s5471_s1 + $0x318] sm:$0xff]  ;;  %v4263_v25 = vld [vmem:[%s5471_s1 + $0x3d0] sm:$0xff] }
  0x45   :  { %2608 = vmatpush.bf16.msra.mxu3 %v4236_v19  ;;  %v4248_v19 = vld [vmem:[%s5471_s1 + $0x358] sm:$0xff] }
  0x46   :  { %2570 = vmatpush.bf16.msra.mxu0 %v4211_v20  ;;  %v4256_v20 = vld [vmem:[%s5471_s1 + $0x398] sm:$0xff] }
  0x47   :  { %2583 = vmatpush.bf16.msra.mxu1 %v4219_v23  ;;  %v4247_v23 = vld [vmem:[%s5471_s1 + $0x350] sm:$0xff] }
  0x48   :  { %2596 = vmatpush.bf16.msra.mxu2 %v4227_v24  ;;  %v4255_v24 = vld [vmem:[%s5471_s1 + $0x390] sm:$0xff] }
  0x49   :  { %2609 = vmatpush.bf16.msra.mxu3 %v4235_v30  ;;  %v4237_v30 = vld [vmem:[%s5471_s1 + $0x300] sm:$0xff] }
  0x4a   :  { %2571 = vmatpush.bf16.msra.mxu0 %v4210_v33  ;;  %v4261_v33 = vld [vmem:[%s5471_s1 + $0x3c0] sm:$0xff] }
  0x4b   :  { %2584 = vmatpush.bf16.msra.mxu1 %v4218_v34  ;;  %v4276_v34 = vld [vmem:[%s5471_s1 + $0x438] sm:$0xff] }
  0x4c   :  { %2597 = vmatpush.bf16.msra.mxu2 %v4226_v35  ;;  %v4284_v35 = vld [vmem:[%s5471_s1 + $0x478] sm:$0xff] }
  0x4d   :  { %2610 = vmatpush.bf16.msra.mxu3 %v4234_v36  ;;  %v4292_v36 = vld [vmem:[%s5471_s1 + $0x4b8] sm:$0xff] }
  0x4e   :  { %2572 = vmatpush.bf16.msra.mxu0 %v4209_v37  ;;  %v4300_v37 = vld [vmem:[%s5471_s1 + $0x4f8] sm:$0xff] }
  0x4f   :  { %2585 = vmatpush.bf16.msra.mxu1 %v4217_v38  ;;  %v133_v38 = vpack.c.bf16 %v4845_v4, %v4845_v4  ;;  %v4285_v4 = vld [vmem:[%s5471_s1 + $0x480] sm:$0xff] }
  0x50   :  { %2598 = vmatpush.bf16.msra.mxu2 %v4225_v39  ;;  %v135_v39 = vpack.c.bf16 %v4847_v5, %v4847_v5  ;;  %v4293_v5 = vld [vmem:[%s5471_s1 + $0x4c0] sm:$0xff] }
  0x51   :  { %2611 = vmatpush.bf16.msra.mxu3 %v4233_v40  ;;  %v134_v40 = vpack.c.bf16 %v4849_v6, %v4849_v6  ;;  %v4308_v6 = vld [vmem:[%s5471_s1 + $0x538] sm:$0xff] }
  0x52   :  { %2573 = vmatpush.bf16.msra.mxu0 %v4208_v41  ;;  %v136_v41 = vpack.c.bf16 %v4857_v9, %v4857_v9  ;;  %v64_v9 = vld.sshfl [vmem:[#allocation1 + $0x10] sm:$0xff pattern:$0x73625140] }
  0x53   :  { %2586 = vmatpush.bf16.msra.mxu1 %v4216_v42  ;;  %v4275_v42 = vld [vmem:[%s5471_s1 + $0x430] sm:$0xff] }
  0x54   :  { %2599 = vmatpush.bf16.msra.mxu2 %v4224_v43  ;;  %v4283_v43 = vld [vmem:[%s5471_s1 + $0x470] sm:$0xff] }
  0x55   :  { %2612 = vmatpush.bf16.msra.mxu3 %v4232_v44  ;;  %v4291_v44 = vld [vmem:[%s5471_s1 + $0x4b0] sm:$0xff] }
  0x56   :  { %2574 = vmatpush.bf16.msra.mxu0 %v4207_v45  ;;  %v4299_v45 = vld [vmem:[%s5471_s1 + $0x4f0] sm:$0xff] }
  0x57   :  { %2587 = vmatpush.bf16.msra.mxu1 %v4215_v46  ;;  %v4274_v46 = vld [vmem:[%s5471_s1 + $0x428] sm:$0xff] }
  0x58   :  { %2600 = vmatpush.bf16.msra.mxu2 %v4223_v47  ;;  %v4282_v47 = vld [vmem:[%s5471_s1 + $0x468] sm:$0xff] }
  0x59   :  { %2613 = vmatpush.bf16.msra.mxu3 %v4231_v48  ;;  %v4290_v48 = vld [vmem:[%s5471_s1 + $0x4a8] sm:$0xff] }
  0x5a   :  { %2575 = vmatpush.bf16.msra.mxu0 %v4206_v49  ;;  %v4298_v49 = vld [vmem:[%s5471_s1 + $0x4e8] sm:$0xff] }
  0x5b   :  { %2588 = vmatpush.bf16.msra.mxu1 %v4214_v50  ;;  %v4273_v50 = vld [vmem:[%s5471_s1 + $0x420] sm:$0xff] }
  0x5c   :  { %2601 = vmatpush.bf16.msra.mxu2 %v4222_v51  ;;  %v4281_v51 = vld [vmem:[%s5471_s1 + $0x460] sm:$0xff] }
  0x5d   :  { %2614 = vmatpush.bf16.msra.mxu3 %v4230_v52  ;;  %v4289_v52 = vld [vmem:[%s5471_s1 + $0x4a0] sm:$0xff] }
  0x5e   :  { %2576 = vmatpush.bf16.msra.mxu0 %v4205_v53  ;;  %v4297_v53 = vld [vmem:[%s5471_s1 + $0x4e0] sm:$0xff] }
  0x5f   :  { %2589 = vmatpush.bf16.msra.mxu1 %v4213_v54  ;;  %v4272_v54 = vld [vmem:[%s5471_s1 + $0x418] sm:$0xff] }
  0x60   :  { %2602 = vmatpush.bf16.msra.mxu2 %v4221_v55  ;;  %v4280_v55 = vld [vmem:[%s5471_s1 + $0x458] sm:$0xff] }
  0x61   :  { %2615 = vmatpush.bf16.msra.mxu3 %v4229_v56  ;;  %2577 = vmatmul.bf16.vlgmr.msra.gmra.mxu0 %v129_v61  ;;  %v4288_v56 = vld [vmem:[%s5471_s1 + $0x498] sm:$0xff]  ;;  %v4295_v61 = vld [vmem:[%s5471_s1 + $0x4d0] sm:$0xff] }
  0x62   :  { %2621 = vmatpush.bf16.msrb.mxu0 %v4244_v57  ;;  %2590 = vmatmul.bf16.vlgmr.msra.gmra.mxu1 %v130_v0  ;;  %v4296_v57 = vld [vmem:[%s5471_s1 + $0x4d8] sm:$0xff]  ;;  %v4286_v0 = vld [vmem:[%s5471_s1 + $0x488] sm:$0xff] }
  0x63   :  { %2634 = vmatpush.bf16.msrb.mxu1 %v4252_v58  ;;  %2603 = vmatmul.bf16.vlgmr.msra.gmra.mxu2 %v131_v62  ;;  %v4271_v58 = vld [vmem:[%s5471_s1 + $0x410] sm:$0xff]  ;;  %v4270_v62 = vld [vmem:[%s5471_s1 + $0x408] sm:$0xff] }
  0x64   :  { %2647 = vmatpush.bf16.msrb.mxu2 %v4260_v59  ;;  %2616 = vmatmul.bf16.vlgmr.msra.gmra.mxu3 %v132_v1  ;;  %v4279_v59 = vld [vmem:[%s5471_s1 + $0x450] sm:$0xff]  ;;  %v4294_v1 = vld [vmem:[%s5471_s1 + $0x4c8] sm:$0xff] }
  0x65   :  { %2660 = vmatpush.bf16.msrb.mxu3 %v4268_v60  ;;  %v4287_v60 = vld [vmem:[%s5471_s1 + $0x490] sm:$0xff] }
  0x66   :  { %2622 = vmatpush.bf16.msrb.mxu0 %v4243_v63  ;;  %v4278_v63 = vld [vmem:[%s5471_s1 + $0x448] sm:$0xff] }
  0x67   :  { %2635 = vmatpush.bf16.msrb.mxu1 %v4251_v2  ;;  %v4269_v2 = vld [vmem:[%s5471_s1 + $0x400] sm:$0xff] }
  0x68   :  { %2648 = vmatpush.bf16.msrb.mxu2 %v4259_v3  ;;  %v4277_v3 = vld [vmem:[%s5471_s1 + $0x440] sm:$0xff] }
  0x69   :  { %2661 = vmatpush.bf16.msrb.mxu3 %v4267_v7  ;;  %v4316_v7 = vld [vmem:[%s5471_s1 + $0x578] sm:$0xff] }
  0x6a   :  { %2623 = vmatpush.bf16.msrb.mxu0 %v4242_v10  ;;  %v63_v10 = vld.sshfl [vmem:[#allocation1 + $0x8] sm:$0xff pattern:$0x73625140] }
  0x6b   :  { %2636 = vmatpush.bf16.msrb.mxu1 %v4250_v11  ;;  %v65_v11 = vld.sshfl [vmem:[#allocation1 + $0x18] sm:$0xff pattern:$0x73625140] }
  0x6c   :  { %2649 = vmatpush.bf16.msrb.mxu2 %v4258_v12  ;;  %v4324_v12 = vld [vmem:[%s5471_s1 + $0x5b8] sm:$0xff] }
  0x6d   :  { %2662 = vmatpush.bf16.msrb.mxu3 %v4266_v13  ;;  %v4332_v13 = vld [vmem:[%s5471_s1 + $0x5f8] sm:$0xff] }
  0x6e   :  { %2624 = vmatpush.bf16.msrb.mxu0 %v4241_v14  ;;  %v137_v14 = vpack.c.bf16 %v62_v8, %v62_v8  ;;  %v4339_v8 = vld [vmem:[%s5471_s1 + $0x630] sm:$0xff] }
  0x6f   :  { %2637 = vmatpush.bf16.msrb.mxu1 %v4249_v15  ;;  %v139_v15 = vpack.c.bf16 %v64_v9, %v64_v9  ;;  %v4347_v9 = vld [vmem:[%s5471_s1 + $0x670] sm:$0xff] }
  0x70   :  { %2650 = vmatpush.bf16.msrb.mxu2 %v4257_v16  ;;  %v138_v16 = vpack.c.bf16 %v63_v10, %v63_v10  ;;  %v4355_v10 = vld [vmem:[%s5471_s1 + $0x6b0] sm:$0xff] }
  0x71   :  { %2663 = vmatpush.bf16.msrb.mxu3 %v4265_v17  ;;  %v140_v17 = vpack.c.bf16 %v65_v11, %v65_v11  ;;  %v4363_v11 = vld [vmem:[%s5471_s1 + $0x6f0] sm:$0xff] }
  0x72   :  { %2625 = vmatpush.bf16.msrb.mxu0 %v4240_v18  ;;  %v4307_v18 = vld [vmem:[%s5471_s1 + $0x530] sm:$0xff] }
  0x73   :  { %2638 = vmatpush.bf16.msrb.mxu1 %v4248_v19  ;;  %v4315_v19 = vld [vmem:[%s5471_s1 + $0x570] sm:$0xff] }
  0x74   :  { %2651 = vmatpush.bf16.msrb.mxu2 %v4256_v20  ;;  %v4323_v20 = vld [vmem:[%s5471_s1 + $0x5b0] sm:$0xff] }
  0x75   :  { %2664 = vmatpush.bf16.msrb.mxu3 %v4264_v21  ;;  %v4331_v21 = vld [vmem:[%s5471_s1 + $0x5f0] sm:$0xff] }
  0x76   :  { %2626 = vmatpush.bf16.msrb.mxu0 %v4239_v22  ;;  %v4306_v22 = vld [vmem:[%s5471_s1 + $0x528] sm:$0xff] }
  0x77   :  { %2639 = vmatpush.bf16.msrb.mxu1 %v4247_v23  ;;  %v4314_v23 = vld [vmem:[%s5471_s1 + $0x568] sm:$0xff] }
  0x78   :  { %2652 = vmatpush.bf16.msrb.mxu2 %v4255_v24  ;;  %v4430_v24 = vld [vmem:[%s5472_s2] ss:$0 sm:$0xff] }
  0x79   :  { %2665 = vmatpush.bf16.msrb.mxu3 %v4263_v25  ;;  %v4322_v25 = vld [vmem:[%s5471_s1 + $0x5a8] sm:$0xff] }
  0x7a   :  { %2627 = vmatpush.bf16.msrb.mxu0 %v4238_v26  ;;  %v4330_v26 = vld [vmem:[%s5471_s1 + $0x5e8] sm:$0xff] }
  0x7b   :  { %2640 = vmatpush.bf16.msrb.mxu1 %v4246_v27 }
  0x7c   :  { %2653 = vmatpush.bf16.msrb.mxu2 %v4254_v28  ;;  %v4305_v28 = vld [vmem:[%s5471_s1 + $0x520] sm:$0xff] }
  0x7d   :  { %2666 = vmatpush.bf16.msrb.mxu3 %v4262_v29  ;;  %v4313_v29 = vld [vmem:[%s5471_s1 + $0x560] sm:$0xff] }
  0x7e   :  { %2628 = vmatpush.bf16.msrb.mxu0 %v4237_v30 }
  0x7f   :  { %2641 = vmatpush.bf16.msrb.mxu1 %v4245_v31 }
  0x80   :  { %2654 = vmatpush.bf16.msrb.mxu2 %v4253_v32  ;;  %v4321_v32 = vld [vmem:[%s5471_s1 + $0x5a0] sm:$0xff] }
  0x81   :  { %2667 = vmatpush.bf16.msrb.mxu3 %v4261_v33  ;;  %2629 = vmatmul.bf16.vlgmr.msrb.gmra.mxu0 %v133_v38  ;;  %v4329_v33 = vld [vmem:[%s5471_s1 + $0x5e0] sm:$0xff]  ;;  %v4328_v38 = vld [vmem:[%s5471_s1 + $0x5d8] sm:$0xff] }
  0x82   :  { %2673 = vmatpush.bf16.msra.mxu0 %v4276_v34  ;;  %2642 = vmatmul.bf16.vlgmr.msrb.gmra.mxu1 %v134_v40 }
  0x83   :  { %2686 = vmatpush.bf16.msra.mxu1 %v4284_v35  ;;  %2655 = vmatmul.bf16.vlgmr.msrb.gmra.mxu2 %v135_v39  ;;  %v4304_v35 = vld [vmem:[%s5471_s1 + $0x518] sm:$0xff] }
  0x84   :  { %2699 = vmatpush.bf16.msra.mxu2 %v4292_v36  ;;  %2668 = vmatmul.bf16.vlgmr.msrb.gmra.mxu3 %v136_v41  ;;  %v4312_v36 = vld [vmem:[%s5471_s1 + $0x558] sm:$0xff] }
  0x85   :  { %2712 = vmatpush.bf16.msra.mxu3 %v4300_v37  ;;  %v4320_v37 = vld [vmem:[%s5471_s1 + $0x598] sm:$0xff] }
  0x86   :  { %2674 = vmatpush.bf16.msra.mxu0 %v4275_v42 }
  0x87   :  { %2687 = vmatpush.bf16.msra.mxu1 %v4283_v43  ;;  %v4303_v43 = vld [vmem:[%s5471_s1 + $0x510] sm:$0xff] }
  0x88   :  { %2700 = vmatpush.bf16.msra.mxu2 %v4291_v44  ;;  %v4311_v44 = vld [vmem:[%s5471_s1 + $0x550] sm:$0xff] }
  0x89   :  { %2713 = vmatpush.bf16.msra.mxu3 %v4299_v45 }
  0x8a   :  { %2675 = vmatpush.bf16.msra.mxu0 %v4274_v46 }
  0x8b   :  { %2688 = vmatpush.bf16.msra.mxu1 %v4282_v47  ;;  %v4319_v47 = vld [vmem:[%s5471_s1 + $0x590] sm:$0xff] }
  0x8c   :  { %2701 = vmatpush.bf16.msra.mxu2 %v4290_v48  ;;  %v4327_v48 = vld [vmem:[%s5471_s1 + $0x5d0] sm:$0xff] }
  0x8d   :  { %2714 = vmatpush.bf16.msra.mxu3 %v4298_v49  ;;  %v4302_v49 = vld [vmem:[%s5471_s1 + $0x508] sm:$0xff] }
  0x8e   :  { %2676 = vmatpush.bf16.msra.mxu0 %v4273_v50  ;;  %v4310_v50 = vld [vmem:[%s5471_s1 + $0x548] sm:$0xff] }
  0x8f   :  { %2689 = vmatpush.bf16.msra.mxu1 %v4281_v51  ;;  %v27_v51 = vld [vmem:[%s5470_s0 + $0x30] sm:$0xff] }
  0x90   :  { %2702 = vmatpush.bf16.msra.mxu2 %v4289_v52  ;;  %v4318_v52 = vld [vmem:[%s5471_s1 + $0x588] sm:$0xff]  ;;  %70 = vst [vmem:[#allocation1] ss:$4 sm:$0xff] %v27_v51 }
  0x91   :  { %2715 = vmatpush.bf16.msra.mxu3 %v4297_v53  ;;  %v4326_v53 = vld [vmem:[%s5471_s1 + $0x5c8] sm:$0xff] }
  0x92   :  { %2677 = vmatpush.bf16.msra.mxu0 %v4272_v54 }
  0x93   :  { %2690 = vmatpush.bf16.msra.mxu1 %v4280_v55 }
  0x94   :  { %2703 = vmatpush.bf16.msra.mxu2 %v4288_v56  ;;  %v4301_v56 = vld [vmem:[%s5471_s1 + $0x500] sm:$0xff] }
  0x95   :  { %2716 = vmatpush.bf16.msra.mxu3 %v4296_v57  ;;  %v4309_v57 = vld [vmem:[%s5471_s1 + $0x540] sm:$0xff] }
  0x96   :  { %2678 = vmatpush.bf16.msra.mxu0 %v4271_v58  ;;  %v4317_v58 = vld [vmem:[%s5471_s1 + $0x580] sm:$0xff] }
  0x97   :  { %2691 = vmatpush.bf16.msra.mxu1 %v4279_v59  ;;  %v4325_v59 = vld [vmem:[%s5471_s1 + $0x5c0] sm:$0xff] }
  0x98   :  { %2704 = vmatpush.bf16.msra.mxu2 %v4287_v60  ;;  %v4340_v60 = vld [vmem:[%s5471_s1 + $0x638] sm:$0xff]  ;;  %v72_v51 = vld.sshfl [vmem:[#allocation1] sm:$0xff pattern:$0x73625140] }
  0x99   :  { %2717 = vmatpush.bf16.msra.mxu3 %v4295_v61  ;;  %v4348_v61 = vld [vmem:[%s5471_s1 + $0x678] sm:$0xff] }
  0x9a   :  { %2679 = vmatpush.bf16.msra.mxu0 %v4270_v62  ;;  %v66_v62 = vld.sshfl [vmem:[#allocation1 + $0x20] sm:$0xff pattern:$0x73625140] }
  0x9b   :  { %2692 = vmatpush.bf16.msra.mxu1 %v4278_v63  ;;  %v68_v63 = vld.sshfl [vmem:[#allocation1 + $0x30] sm:$0xff pattern:$0x73625140] }
  0x9c   :  { %2705 = vmatpush.bf16.msra.mxu2 %v4286_v0  ;;  %v67_v0 = vld.sshfl [vmem:[#allocation1 + $0x28] sm:$0xff pattern:$0x73625140] }
  0x9d   :  { %2718 = vmatpush.bf16.msra.mxu3 %v4294_v1  ;;  %v69_v1 = vld.sshfl [vmem:[#allocation1 + $0x38] sm:$0xff pattern:$0x73625140] }
  0x9e   :  { %2680 = vmatpush.bf16.msra.mxu0 %v4269_v2  ;;  %v2474_v27 = vpop.f32.mrf.mxu0  ;;  %v4356_v2 = vld [vmem:[%s5471_s1 + $0x6b8] sm:$0xff] }
  0x9f   :  { %2693 = vmatpush.bf16.msra.mxu1 %v4277_v3  ;;  %v2475_v30 = vadd.f32 %v4430_v24, %v2474_v27  ;;  %v2487_v31 = vpop.f32.mrf.mxu1  ;;  %v4364_v3 = vld [vmem:[%s5471_s1 + $0x6f8] sm:$0xff] }
  0xa0   :  { %2706 = vmatpush.bf16.msra.mxu2 %v4285_v4  ;;  %v141_v4 = vpack.c.bf16 %v66_v62, %v66_v62  ;;  %v4336_v24 = vld [vmem:[%s5471_s1 + $0x618] sm:$0xff]  ;;  %v4379_v62 = vld [vmem:[%s5471_s1 + $0x770] sm:$0xff] }
  0xa1   :  { %2719 = vmatpush.bf16.msra.mxu3 %v4293_v5  ;;  %2681 = vmatmul.bf16.vlgmr.msra.gmra.mxu0 %v137_v14  ;;  %v2488_v34 = vadd.f32 %v2487_v31, %v2475_v30  ;;  %v143_v5 = vpack.c.bf16 %v68_v63, %v68_v63  ;;  %v4354_v14 = vld [vmem:[%s5471_s1 + $0x6a8] sm:$0xff]  ;;  %v4360_v27 = vld [vmem:[%s5471_s1 + $0x6d8] sm:$0xff]  ;;  %v4387_v63 = vld [vmem:[%s5471_s1 + $0x7b0] sm:$0xff] }
  0xa2   :  { %2725 = vmatpush.bf16.msrb.mxu0 %v4308_v6  ;;  %2694 = vmatmul.bf16.vlgmr.msra.gmra.mxu1 %v138_v16  ;;  %v142_v6 = vpack.c.bf16 %v67_v0, %v67_v0  ;;  %v4395_v0 = vld [vmem:[%s5471_s1 + $0x7f0] sm:$0xff] }
  0xa3   :  { %2738 = vmatpush.bf16.msrb.mxu1 %v4316_v7  ;;  %2707 = vmatmul.bf16.vlgmr.msra.gmra.mxu2 %v139_v15  ;;  %v144_v7 = vpack.c.bf16 %v69_v1, %v69_v1  ;;  %v4362_v15 = vld [vmem:[%s5471_s1 + $0x6e8] sm:$0xff] }
  0xa4   :  { %2751 = vmatpush.bf16.msrb.mxu2 %v4324_v12  ;;  %2720 = vmatmul.bf16.vlgmr.msra.gmra.mxu3 %v140_v17  ;;  %v4338_v12 = vld [vmem:[%s5471_s1 + $0x628] sm:$0xff]  ;;  %v4337_v17 = vld [vmem:[%s5471_s1 + $0x620] sm:$0xff] }
  0xa5   :  { %2764 = vmatpush.bf16.msrb.mxu3 %v4332_v13  ;;  %v4346_v13 = vld [vmem:[%s5471_s1 + $0x668] sm:$0xff] }
  0xa6   :  { %2726 = vmatpush.bf16.msrb.mxu0 %v4307_v18  ;;  %v2500_v39 = vpop.f32.mrf.mxu2  ;;  %v2476_v42 = vpop.f32.mrf.mxu0  ;;  %v4345_v18 = vld [vmem:[%s5471_s1 + $0x660] sm:$0xff]  ;;  %v4370_v1 = vld [vmem:[%s5471_s1 + $0x728] sm:$0xff] }
  0xa7   :  { %2739 = vmatpush.bf16.msrb.mxu1 %v4315_v19  ;;  %v2501_v40 = vadd.f32 %v2500_v39, %v2488_v34  ;;  %v2513_v41 = vpop.f32.mrf.mxu3  ;;  %v2489_v46 = vpop.f32.mrf.mxu1  ;;  %v4342_v39 = vld [vmem:[%s5471_s1 + $0x648] sm:$0xff] }
  0xa8   :  { %2752 = vmatpush.bf16.msrb.mxu2 %v4323_v20  ;;  %v4358_v42 = vld [vmem:[%s5471_s1 + $0x6c8] sm:$0xff]  ;;  %v4341_v46 = vld [vmem:[%s5471_s1 + $0x640] sm:$0xff] }
  0xa9   :  { %2765 = vmatpush.bf16.msrb.mxu3 %v4331_v21  ;;  %v5104_v45 = vadd.f32 %v2513_v41, %v2501_v40  ;;  %v4353_v21 = vld [vmem:[%s5471_s1 + $0x6a0] sm:$0xff]  ;;  %v28_v40 = vld [vmem:[%s5470_s0 + $0x38] sm:$0xff]  ;;  %v4350_v41 = vld [vmem:[%s5471_s1 + $0x688] sm:$0xff] }
  0xaa   :  { %2727 = vmatpush.bf16.msrb.mxu0 %v4306_v22  ;;  %v4361_v22 = vld [vmem:[%s5471_s1 + $0x6e0] sm:$0xff]  ;;  %71 = vst [vmem:[#allocation1 + $0x20] ss:$4 sm:$0xff] %v28_v40 }
  0xab   :  { %2740 = vmatpush.bf16.msrb.mxu1 %v4314_v23 }
  0xac   :  { %2753 = vmatpush.bf16.msrb.mxu2 %v4322_v25  ;;  %v4344_v25 = vld [vmem:[%s5471_s1 + $0x658] sm:$0xff] }
  0xad   :  { %2766 = vmatpush.bf16.msrb.mxu3 %v4330_v26  ;;  %v4352_v26 = vld [vmem:[%s5471_s1 + $0x698] sm:$0xff] }
  0xae   :  { %2728 = vmatpush.bf16.msrb.mxu0 %v4305_v28  ;;  %v2502_v54 = vpop.f32.mrf.mxu2 }
  0xaf   :  { %2741 = vmatpush.bf16.msrb.mxu1 %v4313_v29  ;;  %v2515_v55 = vpop.f32.mrf.mxu3  ;;  %v75_v54 = vld.sshfl [vmem:[#allocation1 + $0x18] sm:$0xff pattern:$0x73625140] }
  0xb0   :  { %2754 = vmatpush.bf16.msrb.mxu2 %v4321_v32  ;;  %v4335_v32 = vld [vmem:[%s5471_s1 + $0x610] sm:$0xff]  ;;  %v4388_v55 = vld [vmem:[%s5471_s1 + $0x7b8] sm:$0xff] }
  0xb1   :  { %2767 = vmatpush.bf16.msrb.mxu3 %v4329_v33  ;;  %v4343_v33 = vld [vmem:[%s5471_s1 + $0x650] sm:$0xff]  ;;  %v76_v40 = vld.sshfl [vmem:[#allocation1 + $0x20] sm:$0xff pattern:$0x73625140] }
  0xb2   :  { %2729 = vmatpush.bf16.msrb.mxu0 %v4304_v35 }
  0xb3   :  { %2742 = vmatpush.bf16.msrb.mxu1 %v4312_v36  ;;  %v4351_v36 = vld [vmem:[%s5471_s1 + $0x690] sm:$0xff] }
  0xb4   :  { %2755 = vmatpush.bf16.msrb.mxu2 %v4320_v37  ;;  %v4359_v37 = vld [vmem:[%s5471_s1 + $0x6d0] sm:$0xff] }
  0xb5   :  { %2768 = vmatpush.bf16.msrb.mxu3 %v4328_v38  ;;  %v4334_v38 = vld [vmem:[%s5471_s1 + $0x608] sm:$0xff] }
  0xb6   :  { %2730 = vmatpush.bf16.msrb.mxu0 %v4303_v43 }
  0xb7   :  { %2743 = vmatpush.bf16.msrb.mxu1 %v4311_v44 }
  0xb8   :  { %2756 = vmatpush.bf16.msrb.mxu2 %v4319_v47  ;;  %v4349_v47 = vld [vmem:[%s5471_s1 + $0x680] sm:$0xff] }
  0xb9   :  { %2769 = vmatpush.bf16.msrb.mxu3 %v4327_v48  ;;  %v4357_v48 = vld [vmem:[%s5471_s1 + $0x6c0] sm:$0xff] }
  0xba   :  { %2731 = vmatpush.bf16.msrb.mxu0 %v4302_v49  ;;  %v4372_v49 = vld [vmem:[%s5471_s1 + $0x738] sm:$0xff] }
  0xbb   :  { %2744 = vmatpush.bf16.msrb.mxu1 %v4310_v50  ;;  %v4380_v50 = vld [vmem:[%s5471_s1 + $0x778] sm:$0xff] }
  0xbc   :  { %2757 = vmatpush.bf16.msrb.mxu2 %v4318_v52  ;;  %v74_v52 = vld.sshfl [vmem:[#allocation1 + $0x10] sm:$0xff pattern:$0x73625140] }
  0xbd   :  { %2770 = vmatpush.bf16.msrb.mxu3 %v4326_v53  ;;  %v73_v53 = vld.sshfl [vmem:[#allocation1 + $0x8] sm:$0xff pattern:$0x73625140] }
  0xbe   :  { %2732 = vmatpush.bf16.msrb.mxu0 %v4301_v56  ;;  %v2526_v16 = vpop.f32.mrf.mxu0  ;;  %v4396_v56 = vld [vmem:[%s5471_s1 + $0x7f8] sm:$0xff] }
  0xbf   :  { %2745 = vmatpush.bf16.msrb.mxu1 %v4309_v57  ;;  %v2527_v19 = vadd.f32 %v2526_v16, %v5104_v45  ;;  %v2539_v20 = vpop.f32.mrf.mxu1  ;;  %v4333_v45 = vld [vmem:[%s5471_s1 + $0x600] sm:$0xff]  ;;  %v145_v57 = vpack.c.bf16 %v72_v51, %v72_v51  ;;  %v4392_v16 = vld [vmem:[%s5471_s1 + $0x7d8] sm:$0xff]  ;;  %v4411_v51 = vld [vmem:[%s5471_s1 + $0x870] sm:$0xff] }
  0xc0   :  { %2758 = vmatpush.bf16.msrb.mxu2 %v4317_v58  ;;  %v147_v58 = vpack.c.bf16 %v74_v52, %v74_v52  ;;  %v4419_v52 = vld [vmem:[%s5471_s1 + $0x8b0] sm:$0xff] }
  0xc1   :  { %2771 = vmatpush.bf16.msrb.mxu3 %v4325_v59  ;;  %2733 = vmatmul.bf16.vlgmr.msrb.gmra.mxu0 %v141_v4  ;;  %v2540_v23 = vadd.f32 %v2539_v20, %v2527_v19  ;;  %v146_v59 = vpack.c.bf16 %v73_v53, %v73_v53  ;;  %v4394_v4 = vld [vmem:[%s5471_s1 + $0x7e8] sm:$0xff]  ;;  %v4427_v53 = vld [vmem:[%s5471_s1 + $0x8f0] sm:$0xff] }
  0xc2   :  { %2777 = vmatpush.bf16.msra.mxu0 %v4340_v60  ;;  %2746 = vmatmul.bf16.vlgmr.msrb.gmra.mxu1 %v142_v6  ;;  %v148_v60 = vpack.c.bf16 %v75_v54, %v75_v54  ;;  %v4402_v54 = vld [vmem:[%s5471_s1 + $0x828] sm:$0xff] }
  0xc3   :  { %2790 = vmatpush.bf16.msra.mxu1 %v4348_v61  ;;  %2759 = vmatmul.bf16.vlgmr.msrb.gmra.mxu2 %v143_v5  ;;  %v4371_v61 = vld [vmem:[%s5471_s1 + $0x730] sm:$0xff] }
  0xc4   :  { %2803 = vmatpush.bf16.msra.mxu2 %v4356_v2  ;;  %2772 = vmatmul.bf16.vlgmr.msrb.gmra.mxu3 %v144_v7  ;;  %v4378_v2 = vld [vmem:[%s5471_s1 + $0x768] sm:$0xff]  ;;  %v4369_v7 = vld [vmem:[%s5471_s1 + $0x720] sm:$0xff] }
  0xc5   :  { %2816 = vmatpush.bf16.msra.mxu3 %v4364_v3  ;;  %v4386_v3 = vld [vmem:[%s5471_s1 + $0x7a8] sm:$0xff] }
  0xc6   :  { %2778 = vmatpush.bf16.msra.mxu0 %v4339_v8  ;;  %v2552_v28 = vpop.f32.mrf.mxu2  ;;  %v2528_v31 = vpop.f32.mrf.mxu0  ;;  %v4377_v8 = vld [vmem:[%s5471_s1 + $0x760] sm:$0xff] }
  0xc7   :  { %2791 = vmatpush.bf16.msra.mxu1 %v4347_v9  ;;  %v2553_v29 = vadd.f32 %v2552_v28, %v2540_v23  ;;  %v2565_v30 = vpop.f32.mrf.mxu3  ;;  %v2541_v35 = vpop.f32.mrf.mxu1  ;;  %v4375_v23 = vld [vmem:[%s5471_s1 + $0x750] sm:$0xff]  ;;  %v4366_v28 = vld [vmem:[%s5471_s1 + $0x708] sm:$0xff] }
  0xc8   :  { %2804 = vmatpush.bf16.msra.mxu2 %v4355_v10  ;;  %v4385_v10 = vld [vmem:[%s5471_s1 + $0x7a0] sm:$0xff]  ;;  %v4390_v31 = vld [vmem:[%s5471_s1 + $0x7c8] sm:$0xff] }
  0xc9   :  { %2817 = vmatpush.bf16.msra.mxu3 %v4363_v11  ;;  %v5206_v34 = vadd.f32 %v2565_v30, %v2553_v29  ;;  %v4393_v11 = vld [vmem:[%s5471_s1 + $0x7e0] sm:$0xff]  ;;  %v4374_v29 = vld [vmem:[%s5471_s1 + $0x748] sm:$0xff] }
  0xca   :  { %2779 = vmatpush.bf16.msra.mxu0 %v4338_v12  ;;  %v4382_v30 = vld [vmem:[%s5471_s1 + $0x788] sm:$0xff]  ;;  %v4373_v35 = vld [vmem:[%s5471_s1 + $0x740] sm:$0xff] }
  0xcb   :  { %2792 = vmatpush.bf16.msra.mxu1 %v4346_v13  ;;  %v4368_v13 = vld [vmem:[%s5471_s1 + $0x718] sm:$0xff] }
  0xcc   :  { %2805 = vmatpush.bf16.msra.mxu2 %v4354_v14  ;;  %v4376_v14 = vld [vmem:[%s5471_s1 + $0x758] sm:$0xff] }
  0xcd   :  { %2818 = vmatpush.bf16.msra.mxu3 %v4362_v15  ;;  %v4384_v15 = vld [vmem:[%s5471_s1 + $0x798] sm:$0xff] }
  0xce   :  { %2780 = vmatpush.bf16.msra.mxu0 %v4337_v17  ;;  %v2554_v43 = vpop.f32.mrf.mxu2 }
  0xcf   :  { %2793 = vmatpush.bf16.msra.mxu1 %v4345_v18  ;;  %v2567_v44 = vpop.f32.mrf.mxu3  ;;  %v79_v43 = vld.sshfl [vmem:[#allocation1 + $0x38] sm:$0xff pattern:$0x73625140] }
  0xd0   :  { %2806 = vmatpush.bf16.msra.mxu2 %v4353_v21  ;;  %v4420_v44 = vld [vmem:[%s5471_s1 + $0x8b8] sm:$0xff] }
  0xd1   :  { %2819 = vmatpush.bf16.msra.mxu3 %v4361_v22  ;;  %v4367_v22 = vld [vmem:[%s5471_s1 + $0x710] sm:$0xff] }
  0xd2   :  { %2781 = vmatpush.bf16.msra.mxu0 %v4336_v24 }
  0xd3   :  { %2794 = vmatpush.bf16.msra.mxu1 %v4344_v25  ;;  %v4383_v25 = vld [vmem:[%s5471_s1 + $0x790] sm:$0xff] }
  0xd4   :  { %2807 = vmatpush.bf16.msra.mxu2 %v4352_v26  ;;  %v4391_v26 = vld [vmem:[%s5471_s1 + $0x7d0] sm:$0xff] }
  0xd5   :  { %2820 = vmatpush.bf16.msra.mxu3 %v4360_v27  ;;  %v29_v27 = vld [vmem:[%s5470_s0 + $0x40] sm:$0xff] }
  0xd6   :  { %2782 = vmatpush.bf16.msra.mxu0 %v4335_v32  ;;  %80 = vst [vmem:[#allocation1] ss:$4 sm:$0xff] %v29_v27 }
  0xd7   :  { %2795 = vmatpush.bf16.msra.mxu1 %v4343_v33 }
  0xd8   :  { %2808 = vmatpush.bf16.msra.mxu2 %v4351_v36  ;;  %v4381_v36 = vld [vmem:[%s5471_s1 + $0x780] sm:$0xff] }
  0xd9   :  { %2821 = vmatpush.bf16.msra.mxu3 %v4359_v37  ;;  %v4389_v37 = vld [vmem:[%s5471_s1 + $0x7c0] sm:$0xff] }
  0xda   :  { %2783 = vmatpush.bf16.msra.mxu0 %v4334_v38  ;;  %v4404_v38 = vld [vmem:[%s5471_s1 + $0x838] sm:$0xff] }
  0xdb   :  { %2796 = vmatpush.bf16.msra.mxu1 %v4342_v39  ;;  %v4412_v39 = vld [vmem:[%s5471_s1 + $0x878] sm:$0xff] }
  0xdc   :  { %2809 = vmatpush.bf16.msra.mxu2 %v4350_v41  ;;  %v78_v41 = vld.sshfl [vmem:[#allocation1 + $0x30] sm:$0xff pattern:$0x73625140] }
  0xdd   :  { %2822 = vmatpush.bf16.msra.mxu3 %v4358_v42  ;;  %v77_v42 = vld.sshfl [vmem:[#allocation1 + $0x28] sm:$0xff pattern:$0x73625140] }
  0xde   :  { %2784 = vmatpush.bf16.msra.mxu0 %v4333_v45  ;;  %v2578_v5 = vpop.f32.mrf.mxu0  ;;  %v4428_v45 = vld [vmem:[%s5471_s1 + $0x8f8] sm:$0xff]  ;;  %v82_v27 = vld.sshfl [vmem:[#allocation1 + $0x8] sm:$0xff pattern:$0x73625140] }
  0xdf   :  { %2797 = vmatpush.bf16.msra.mxu1 %v4341_v46  ;;  %v2579_v6 = vadd.f32 %v2578_v5, %v5206_v34  ;;  %v2591_v9 = vpop.f32.mrf.mxu1  ;;  %v4365_v34 = vld [vmem:[%s5471_s1 + $0x700] sm:$0xff]  ;;  %v149_v46 = vpack.c.bf16 %v76_v40, %v76_v40  ;;  %v4424_v5 = vld [vmem:[%s5471_s1 + $0x8d8] sm:$0xff] }
  0xe0   :  { %2810 = vmatpush.bf16.msra.mxu2 %v4349_v47  ;;  %v151_v47 = vpack.c.bf16 %v78_v41, %v78_v41 }
  0xe1   :  { %2823 = vmatpush.bf16.msra.mxu3 %v4357_v48  ;;  %2785 = vmatmul.bf16.vlgmr.msra.gmra.mxu0 %v145_v57  ;;  %v2592_v12 = vadd.f32 %v2591_v9, %v2579_v6  ;;  %v150_v48 = vpack.c.bf16 %v77_v42, %v77_v42  ;;  %v4426_v57 = vld [vmem:[%s5471_s1 + $0x8e8] sm:$0xff] }
  0xe2   :  { %2829 = vmatpush.bf16.msrb.mxu0 %v4372_v49  ;;  %2798 = vmatmul.bf16.vlgmr.msra.gmra.mxu1 %v146_v59  ;;  %v152_v49 = vpack.c.bf16 %v79_v43, %v79_v43 }
  0xe3   :  { %2842 = vmatpush.bf16.msrb.mxu1 %v4380_v50  ;;  %2811 = vmatmul.bf16.vlgmr.msra.gmra.mxu2 %v147_v58  ;;  %v4403_v50 = vld [vmem:[%s5471_s1 + $0x830] sm:$0xff] }
  0xe4   :  { %2855 = vmatpush.bf16.msrb.mxu2 %v4388_v55  ;;  %2824 = vmatmul.bf16.vlgmr.msra.gmra.mxu3 %v148_v60  ;;  %v4410_v55 = vld [vmem:[%s5471_s1 + $0x868] sm:$0xff]  ;;  %v4401_v60 = vld [vmem:[%s5471_s1 + $0x820] sm:$0xff] }
  0xe5   :  { %2868 = vmatpush.bf16.msrb.mxu3 %v4396_v56  ;;  %v4418_v56 = vld [vmem:[%s5471_s1 + $0x8a8] sm:$0xff] }
  0xe6   :  { %2830 = vmatpush.bf16.msrb.mxu0 %v4371_v61  ;;  %v2604_v17 = vpop.f32.mrf.mxu2  ;;  %v2580_v20 = vpop.f32.mrf.mxu0  ;;  %v4409_v61 = vld [vmem:[%s5471_s1 + $0x860] sm:$0xff] }
  0xe7   :  { %2843 = vmatpush.bf16.msrb.mxu1 %v4379_v62  ;;  %v2605_v18 = vadd.f32 %v2604_v17, %v2592_v12  ;;  %v2617_v19 = vpop.f32.mrf.mxu3  ;;  %v2593_v24 = vpop.f32.mrf.mxu1  ;;  %v4407_v12 = vld [vmem:[%s5471_s1 + $0x850] sm:$0xff]  ;;  %v4406_v17 = vld [vmem:[%s5471_s1 + $0x848] sm:$0xff] }
  0xe8   :  { %2856 = vmatpush.bf16.msrb.mxu2 %v4387_v63  ;;  %v4417_v63 = vld [vmem:[%s5471_s1 + $0x8a0] sm:$0xff] }
  0xe9   :  { %2869 = vmatpush.bf16.msrb.mxu3 %v4395_v0  ;;  %v5302_v21 = vadd.f32 %v2617_v19, %v2605_v18  ;;  %v4425_v0 = vld [vmem:[%s5471_s1 + $0x8e0] sm:$0xff]  ;;  %v4414_v18 = vld [vmem:[%s5471_s1 + $0x888] sm:$0xff] }
  0xea   :  { %2831 = vmatpush.bf16.msrb.mxu0 %v4370_v1  ;;  %v4422_v19 = vld [vmem:[%s5471_s1 + $0x8c8] sm:$0xff]  ;;  %v4413_v24 = vld [vmem:[%s5471_s1 + $0x880] sm:$0xff] }
  0xeb   :  { %2844 = vmatpush.bf16.msrb.mxu1 %v4378_v2  ;;  %v4400_v2 = vld [vmem:[%s5471_s1 + $0x818] sm:$0xff] }
  0xec   :  { %2857 = vmatpush.bf16.msrb.mxu2 %v4386_v3  ;;  %v4408_v3 = vld [vmem:[%s5471_s1 + $0x858] sm:$0xff] }
  0xed   :  { %2870 = vmatpush.bf16.msrb.mxu3 %v4394_v4  ;;  %v4416_v4 = vld [vmem:[%s5471_s1 + $0x898] sm:$0xff] }
  0xee   :  { %2832 = vmatpush.bf16.msrb.mxu0 %v4369_v7  ;;  %v2606_v32 = vpop.f32.mrf.mxu2 }
  0xef   :  { %2845 = vmatpush.bf16.msrb.mxu1 %v4377_v8  ;;  %v2619_v33 = vpop.f32.mrf.mxu3 }
  0xf0   :  { %2858 = vmatpush.bf16.msrb.mxu2 %v4385_v10 }
  0xf1   :  { %2871 = vmatpush.bf16.msrb.mxu3 %v4393_v11  ;;  %v4399_v11 = vld [vmem:[%s5471_s1 + $0x810] sm:$0xff] }
  0xf2   :  { %2833 = vmatpush.bf16.msrb.mxu0 %v4368_v13 }
  0xf3   :  { %2846 = vmatpush.bf16.msrb.mxu1 %v4376_v14  ;;  %v4415_v14 = vld [vmem:[%s5471_s1 + $0x890] sm:$0xff] }
  0xf4   :  { %2859 = vmatpush.bf16.msrb.mxu2 %v4384_v15  ;;  %v4423_v15 = vld [vmem:[%s5471_s1 + $0x8d0] sm:$0xff] }
  0xf5   :  { %2872 = vmatpush.bf16.msrb.mxu3 %v4392_v16  ;;  %v4398_v16 = vld [vmem:[%s5471_s1 + $0x808] sm:$0xff] }
  0xf6   :  { %2834 = vmatpush.bf16.msrb.mxu0 %v4367_v22 }
  0xf7   :  { %2847 = vmatpush.bf16.msrb.mxu1 %v4375_v23  ;;  %v4405_v23 = vld [vmem:[%s5471_s1 + $0x840] sm:$0xff] }
  0xf8   :  { %2860 = vmatpush.bf16.msrb.mxu2 %v4383_v25  ;;  %v4421_v25 = vld [vmem:[%s5471_s1 + $0x8c0] sm:$0xff] }
  0xf9   :  { %2873 = vmatpush.bf16.msrb.mxu3 %v4391_v26  ;;  %v81_v26 = vld.sshfl [vmem:[#allocation1] sm:$0xff pattern:$0x73625140] }
  0xfa   :  { %2835 = vmatpush.bf16.msrb.mxu0 %v4366_v28  ;;  %v83_v28 = vld.sshfl [vmem:[#allocation1 + $0x10] sm:$0xff pattern:$0x73625140] }
  0xfb   :  { %2848 = vmatpush.bf16.msrb.mxu1 %v4374_v29  ;;  %v84_v29 = vld.sshfl [vmem:[#allocation1 + $0x18] sm:$0xff pattern:$0x73625140]  ;;  %v155_v32 = vpack.c.bf16 %v83_v28, %v83_v28 }
  0xfc   :  { %2861 = vmatpush.bf16.msrb.mxu2 %v4382_v30  ;;  %v153_v30 = vpack.c.bf16 %v81_v26, %v81_v26  ;;  %v156_v33 = vpack.c.bf16 %v84_v29, %v84_v29 }
  0xfd   :  { %2874 = vmatpush.bf16.msrb.mxu3 %v4390_v31  ;;  %v154_v31 = vpack.c.bf16 %v82_v27, %v82_v27 }
  0xfe   :  { %2836 = vmatpush.bf16.msrb.mxu0 %v4365_v34  ;;  %v2630_v58 = vpop.f32.mrf.mxu0 }
  0xff   :  { %2849 = vmatpush.bf16.msrb.mxu1 %v4373_v35  ;;  %v2631_v59 = vadd.f32 %v2630_v58, %v5302_v21  ;;  %v2643_v62 = vpop.f32.mrf.mxu1  ;;  %v4397_v21 = vld [vmem:[%s5471_s1 + $0x800] sm:$0xff] }
 0x100   :  { %2862 = vmatpush.bf16.msrb.mxu2 %v4381_v36 }
 0x101   :  { %2875 = vmatpush.bf16.msrb.mxu3 %v4389_v37  ;;  %2837 = vmatmul.bf16.vlgmr.msrb.gmra.mxu0 %v149_v46  ;;  %v2644_v1 = vadd.f32 %v2643_v62, %v2631_v59 }
 0x102   :  { %2881 = vmatpush.bf16.msra.mxu0 %v4404_v38  ;;  %2850 = vmatmul.bf16.vlgmr.msrb.gmra.mxu1 %v150_v48 }
 0x103   :  { %2894 = vmatpush.bf16.msra.mxu1 %v4412_v39  ;;  %2863 = vmatmul.bf16.vlgmr.msrb.gmra.mxu2 %v151_v47 }
 0x104   :  { %2907 = vmatpush.bf16.msra.mxu2 %v4420_v44  ;;  %2876 = vmatmul.bf16.vlgmr.msrb.gmra.mxu3 %v152_v49 }
 0x105   :  { %2920 = vmatpush.bf16.msra.mxu3 %v4428_v45 }
 0x106   :  { %2882 = vmatpush.bf16.msra.mxu0 %v4403_v50  ;;  %v2656_v6 = vpop.f32.mrf.mxu2  ;;  %v2632_v9 = vpop.f32.mrf.mxu0 }
 0x107   :  { %2895 = vmatpush.bf16.msra.mxu1 %v4411_v51  ;;  %v2657_v7 = vadd.f32 %v2656_v6, %v2644_v1  ;;  %v2669_v8 = vpop.f32.mrf.mxu3  ;;  %v2645_v13 = vpop.f32.mrf.mxu1  ;;  %v2940_v1 = vld [vmem:[%s5473_s3 + $0x30] sm:$0xff]  ;;  %v2938_v6 = vld [vmem:[%s5473_s3 + $0x20] sm:$0xff] }
 0x108   :  { %2908 = vmatpush.bf16.msra.mxu2 %v4419_v52  ;;  %v2936_v9 = vld [vmem:[%s5473_s3 + $0x10] sm:$0xff]  ;;  %v2935_v13 = vld [vmem:[%s5473_s3 + $0x8] sm:$0xff] }
 0x109   :  { %2921 = vmatpush.bf16.msra.mxu3 %v4427_v53  ;;  %v2670_v10 = vadd.f32 %v2669_v8, %v2657_v7  ;;  %v2937_v8 = vld [vmem:[%s5473_s3 + $0x18] sm:$0xff] }
 0x10a   :  { %2883 = vmatpush.bf16.msra.mxu0 %v4402_v54 }
 0x10b   :  { %2896 = vmatpush.bf16.msra.mxu1 %v4410_v55 }
 0x10c   :  { %2909 = vmatpush.bf16.msra.mxu2 %v4418_v56 }
 0x10d   :  { %2922 = vmatpush.bf16.msra.mxu3 %v4426_v57 }
 0x10e   :  { %2884 = vmatpush.bf16.msra.mxu0 %v4401_v60  ;;  %v2658_v20 = vpop.f32.mrf.mxu2 }
 0x10f   :  { %2897 = vmatpush.bf16.msra.mxu1 %v4409_v61  ;;  %v2671_v22 = vpop.f32.mrf.mxu3 }
 0x110   :  { %2910 = vmatpush.bf16.msra.mxu2 %v4417_v63 }
 0x111   :  { %2923 = vmatpush.bf16.msra.mxu3 %v4425_v0  ;;  %v2941_v0 = vld [vmem:[%s5473_s3 + $0x38] sm:$0xff] }
 0x112   :  { %2885 = vmatpush.bf16.msra.mxu0 %v4400_v2 }
 0x113   :  { %2898 = vmatpush.bf16.msra.mxu1 %v4408_v3 }
 0x114   :  { %2911 = vmatpush.bf16.msra.mxu2 %v4416_v4  ;;  %v2939_v4 = vld [vmem:[%s5473_s3 + $0x28] sm:$0xff] }
 0x115   :  { %2924 = vmatpush.bf16.msra.mxu3 %v4424_v5 }
 0x116   :  { %2886 = vmatpush.bf16.msra.mxu0 %v4399_v11 }
 0x117   :  { %2899 = vmatpush.bf16.msra.mxu1 %v4407_v12 }
 0x118   :  { %2912 = vmatpush.bf16.msra.mxu2 %v4415_v14 }
 0x119   :  { %2925 = vmatpush.bf16.msra.mxu3 %v4423_v15 }
 0x11a   :  { %2887 = vmatpush.bf16.msra.mxu0 %v4398_v16  ;;  %v2934_v16 = vld [vmem:[%s5473_s3] sm:$0xff] }
 0x11b   :  { %2900 = vmatpush.bf16.msra.mxu1 %v4406_v17 }
 0x11c   :  { %2913 = vmatpush.bf16.msra.mxu2 %v4414_v18 }
 0x11d   :  { %2926 = vmatpush.bf16.msra.mxu3 %v4422_v19 }
 0x11e   :  { %2888 = vmatpush.bf16.msra.mxu0 %v4397_v21  ;;  %v2682_v34 = vpop.f32.mrf.mxu0 }
 0x11f   :  { %2901 = vmatpush.bf16.msra.mxu1 %v4405_v23  ;;  %v2683_v35 = vadd.f32 %v2682_v34, %v2670_v10  ;;  %v2695_v36 = vpop.f32.mrf.mxu1 }
 0x120   :  { %2914 = vmatpush.bf16.msra.mxu2 %v4413_v24 }
 0x121   :  { %2927 = vmatpush.bf16.msra.mxu3 %v4421_v25  ;;  %2889 = vmatmul.bf16.vlgmr.msra.gmra.mxu0 %v153_v30  ;;  %v2696_v37 = vadd.f32 %v2695_v36, %v2683_v35 }
 0x122   :  { %2902 = vmatmul.bf16.vlgmr.msra.gmra.mxu1 %v154_v31  ;;  %2958 = vmatpush.msrb.mxu0 %v2941_v0 }
 0x123   :  { %2915 = vmatmul.bf16.vlgmr.msra.gmra.mxu2 %v155_v32 }
 0x124   :  { %2928 = vmatmul.bf16.vlgmr.msra.gmra.mxu3 %v156_v33  ;;  %2959 = vmatpush.msrb.mxu0 %v2940_v1 }
 0x126   :  { %v2708_v38 = vpop.f32.mrf.mxu2  ;;  %v2684_v41 = vpop.f32.mrf.mxu0  ;;  %2960 = vmatpush.msrb.mxu0 %v2939_v4 }
 0x127   :  { %v2709_v39 = vadd.f32 %v2708_v38, %v2696_v37  ;;  %v2721_v40 = vpop.f32.mrf.mxu3  ;;  %v2697_v43 = vpop.f32.mrf.mxu1 }
 0x128   :  { %2961 = vmatpush.msrb.mxu0 %v2938_v6 }
 0x129   :  { %v2722_v42 = vadd.f32 %v2721_v40, %v2709_v39  ;;  %v4431_v39 = vld [vmem:[%s5474_s4] ss:$0 sm:$0xff] }
 0x12a   :  { %2962 = vmatpush.msrb.mxu0 %v2937_v8 }
 0x12c   :  { %2963 = vmatpush.msrb.mxu0 %v2936_v9 }
 0x12e   :  { %v2710_v44 = vpop.f32.mrf.mxu2  ;;  %2964 = vmatpush.msrb.mxu0 %v2935_v13 }
 0x12f   :  { %v2723_v45 = vpop.f32.mrf.mxu3 }
 0x130   :  { %2965 = vmatpush.msrb.mxu0 %v2934_v16 }
 0x13e   :  { %v2734_v46 = vpop.f32.mrf.mxu0 }
 0x13f   :  { %v2735_v47 = vadd.f32 %v2734_v46, %v2722_v42  ;;  %v2747_v48 = vpop.f32.mrf.mxu1 }
 0x141   :  { %v2748_v49 = vadd.f32 %v2747_v48, %v2735_v47 }
 0x146   :  { %v2760_v50 = vpop.f32.mrf.mxu2  ;;  %v2736_v53 = vpop.f32.mrf.mxu0 }
 0x147   :  { %v2761_v51 = vadd.f32 %v2760_v50, %v2748_v49  ;;  %v2773_v52 = vpop.f32.mrf.mxu3  ;;  %v2749_v55 = vpop.f32.mrf.mxu1 }
 0x149   :  { %v2774_v54 = vadd.f32 %v2773_v52, %v2761_v51 }
 0x14e   :  { %v2762_v56 = vpop.f32.mrf.mxu2 }
 0x14f   :  { %v2775_v57 = vpop.f32.mrf.mxu3 }
 0x15e   :  { %v2786_v58 = vpop.f32.mrf.mxu0 }
 0x15f   :  { %v2799_v59 = vpop.f32.mrf.mxu1  ;;  %v2787_v11 = vadd.f32 %v2786_v58, %v2774_v54 }
 0x161   :  { %v2800_v17 = vadd.f32 %v2799_v59, %v2787_v11 }
 0x166   :  { %v2812_v60 = vpop.f32.mrf.mxu2  ;;  %v2788_v62 = vpop.f32.mrf.mxu0 }
 0x167   :  { %v2825_v61 = vpop.f32.mrf.mxu3  ;;  %v2801_v63 = vpop.f32.mrf.mxu1  ;;  %v2813_v18 = vadd.f32 %v2812_v60, %v2800_v17 }
 0x169   :  { %v2826_v21 = vadd.f32 %v2825_v61, %v2813_v18 }
 0x16e   :  { %v2814_v2 = vpop.f32.mrf.mxu2 }
 0x16f   :  { %v2827_v3 = vpop.f32.mrf.mxu3 }
 0x17e   :  { %v2838_v5 = vpop.f32.mrf.mxu0 }
 0x17f   :  { %v2851_v7 = vpop.f32.mrf.mxu1  ;;  %v2839_v22 = vadd.f32 %v2838_v5, %v2826_v21 }
 0x181   :  { %v2852_v23 = vadd.f32 %v2851_v7, %v2839_v22 }
 0x186   :  { %v2864_v10 = vpop.f32.mrf.mxu2  ;;  %v2840_v14 = vpop.f32.mrf.mxu0 }
 0x187   :  { %v2877_v12 = vpop.f32.mrf.mxu3  ;;  %v2853_v15 = vpop.f32.mrf.mxu1  ;;  %v2865_v24 = vadd.f32 %v2864_v10, %v2852_v23 }
 0x189   :  { %v2878_v25 = vadd.f32 %v2877_v12, %v2865_v24 }
 0x18e   :  { %v2866_v19 = vpop.f32.mrf.mxu2 }
 0x18f   :  { %v2879_v20 = vpop.f32.mrf.mxu3 }
 0x19e   :  { %v2890_v26 = vpop.f32.mrf.mxu0 }
 0x19f   :  { %v2903_v27 = vpop.f32.mrf.mxu1  ;;  %v2891_v28 = vadd.f32 %v2890_v26, %v2878_v25 }
 0x1a1   :  { %v2904_v29 = vadd.f32 %v2903_v27, %v2891_v28 }
 0x1a6   :  { %v2916_v30 = vpop.f32.mrf.mxu2  ;;  %v2892_v33 = vpop.f32.mrf.mxu0 }
 0x1a7   :  { %v2929_v31 = vpop.f32.mrf.mxu3  ;;  %v2917_v32 = vadd.f32 %v2916_v30, %v2904_v29  ;;  %v2905_v34 = vpop.f32.mrf.mxu1 }
 0x1a9   :  { %v2930_v35 = vadd.f32 %v2929_v31, %v2917_v32 }
 0x1ab   :  { %v2933_v36 = vmax.f32 %v2930_v35, 0.0 }
 0x1ad   :  { %4140 = vmatmul.msk.f32.vlgmr.msrb.gmra.mxu0 %vm2946_vm0, %v2933_v36 }
 0x1ae   :  { %v2918_v37 = vpop.f32.mrf.mxu2 }
 0x1af   :  { %v2931_v38 = vpop.f32.mrf.mxu3 }
 0x22a   :  { %v2967_v40 = vpop.f32.mrf.mxu0 }
 0x22b   :  { %v2968_v41 = vadd.f32 %v4431_v39, %v2967_v40 }
 0x22d   :  { %2971 = vst.msk [vmem:[#allocation2] sm:$0x3] %vm2970_vm1, %v2968_v41 }
 0x22e   :  { %2982 = dma.vmem_to_hbm [thread:$0]  %s2978_s17, 32, %s2980_s20, [#allocation3]  }
 0x22f   :  { %4456 = dma.done.wait [#allocation3], 32  }
 0x230   :  { %4457 = vsyncadd [#allocation3], 4294967264 }
 0x231   :  { %2987 = vsyncpa [#allocation3], 1 }

</bundles_post_ra>
